<compile_context>
chip_gen: v7x
topology: tpu7x:2x2x1
jax: 0.10.0
libtpu: 0.0.40
codegen_flags: <defaults>
</compile_context>

<pallas_src>
import functools
import math

import jax
import jax.numpy as jnp
from jax.experimental import pallas as pl
from jax.experimental.pallas import tpu as pltpu


def _round_up(x, m):
    return (x + m - 1) // m * m


# ----------------------------------------------------------------------------
# Pallas kernels
# ----------------------------------------------------------------------------

def _conv_kernel(len_ref, xc_ref, w_ref, b_ref, o_ref, *, T):
    """im2col conv1d: (T, K*Cin) @ (K*Cin, Cp) + bias, rows >= length zeroed."""
    i = pl.program_id(0)
    length = len_ref[i]
    y = jnp.dot(xc_ref[0], w_ref[...], preferred_element_type=jnp.float32)
    y = y + b_ref[...]
    pos = jax.lax.broadcasted_iota(jnp.int32, (T, 1), 0)
    o_ref[0] = jnp.where(pos < length, y, 0.0)


def _encoder_kernel(len_ref, h_ref, pe_ref,
                    wqkv_ref, bqkv_ref, wo_ref, bo_ref, g1_ref, bln1_ref,
                    wff1_ref, bff1_ref, wff2_ref, bff2_ref, g2_ref, bln2_ref,
                    o_ref, carry_ref, *, T, H, NH, eps, is_causal):
    """One grid step = one (batch, layer) encoder layer on the VMEM carry.

    Fused per layer: QKV proj -> per-head attention -> out proj -> residual
    -> LayerNorm1 -> FF1 + ReLU -> FF2 -> residual -> LayerNorm2.
    """
    hd = H // NH
    scale = 1.0 / math.sqrt(hd)
    b = pl.program_id(0)
    l = pl.program_id(1)
    length = len_ref[b]

    # layer 0: load residual stream from HBM input and add positional encoding
    @pl.when(l == 0)
    def _():
        carry_ref[...] = h_ref[0] + pe_ref[...]

    x = carry_ref[...]                              # (T, H) f32 residual path
    x16 = x.astype(jnp.bfloat16)

    # fused QKV projection (bf16 MXU operands, f32 accumulate)
    qkv = jnp.dot(x16, wqkv_ref[0], preferred_element_type=jnp.float32)
    qkv = qkv + bqkv_ref[0]
    qkv16 = qkv.astype(jnp.bfloat16)

    # additive biases built in-kernel from the length scalar (no HBM masks)
    key_pos = jax.lax.broadcasted_iota(jnp.int32, (1, T), 1)
    bias = jnp.where(key_pos >= length, -1e9, 0.0).astype(jnp.float32)
    if is_causal:
        row = jax.lax.broadcasted_iota(jnp.int32, (T, T), 0)
        col = jax.lax.broadcasted_iota(jnp.int32, (T, T), 1)
        bias = bias + jnp.where(col > row, -1e9, 0.0).astype(jnp.float32)

    # per-head attention; out-projection folded in per head (no concat)
    wo = wo_ref[0]                                   # (H, H) bf16
    acc = jnp.zeros((T, H), jnp.float32)
    for n in range(NH):
        qh = qkv16[:, n * hd:(n + 1) * hd]
        kh = qkv16[:, H + n * hd:H + (n + 1) * hd]
        vh = qkv16[:, 2 * H + n * hd:2 * H + (n + 1) * hd]
        # contract last dims directly (no explicit k.T / XLU transpose)
        s = jax.lax.dot_general(qh, kh, (((1,), (1,)), ((), ())),
                                preferred_element_type=jnp.float32) * scale
        s = s + bias
        m = jnp.max(s, axis=-1, keepdims=True)
        p = jnp.exp(s - m)
        denom = jnp.sum(p, axis=-1, keepdims=True)
        p = p * pl.reciprocal(denom, approx=True)
        oh = jnp.dot(p.astype(jnp.bfloat16), vh,
                     preferred_element_type=jnp.float32)          # (T, hd)
        acc = acc + jnp.dot(oh.astype(jnp.bfloat16),
                            wo[n * hd:(n + 1) * hd, :],
                            preferred_element_type=jnp.float32)

    # residual + post-norm LayerNorm1 (f32, biased variance like PyTorch)
    y = x + acc + bo_ref[0]
    mu = jnp.mean(y, axis=-1, keepdims=True)
    var = jnp.mean(jnp.square(y - mu), axis=-1, keepdims=True)
    y = (y - mu) * jax.lax.rsqrt(var + eps) * g1_ref[0] + bln1_ref[0]

    # feed-forward: FF1 + ReLU -> FF2 -> residual -> LayerNorm2
    a = jnp.dot(y.astype(jnp.bfloat16), wff1_ref[0],
                preferred_element_type=jnp.float32) + bff1_ref[0]
    a = jnp.maximum(a, 0.0)
    f = jnp.dot(a.astype(jnp.bfloat16), wff2_ref[0],
                preferred_element_type=jnp.float32) + bff2_ref[0]
    z = y + f
    mu2 = jnp.mean(z, axis=-1, keepdims=True)
    var2 = jnp.mean(jnp.square(z - mu2), axis=-1, keepdims=True)
    z = (z - mu2) * jax.lax.rsqrt(var2 + eps) * g2_ref[0] + bln2_ref[0]

    carry_ref[...] = z

    # last layer: write the residual stream back to HBM
    @pl.when(l == pl.num_programs(1) - 1)
    def _():
        o_ref[0] = z


# ----------------------------------------------------------------------------
# Wrappers around pallas_call
# ----------------------------------------------------------------------------

def conv1d_same(x_btc, w_kio, bias, lengths):
    """x:(B,T,Cin) f32, w:(K,Cin,Cout), bias:(Cout,), lengths:(B,) -> (B,T,Cout)."""
    B, T, Cin = x_btc.shape
    K, _, Cout = w_kio.shape
    pad_l = (K - 1) // 2
    pad_r = K - 1 - pad_l
    xp = jnp.pad(x_btc, ((0, 0), (pad_l, pad_r), (0, 0)))
    # im2col -> one aligned matmul per batch element (no per-tap sublane shifts)
    cols = jnp.stack([xp[:, k:k + T, :] for k in range(K)], axis=2)
    xc = cols.reshape(B, T, K * Cin).astype(jnp.bfloat16)

    Cp = _round_up(Cout, 128)                       # lane-dense output store
    w = jnp.pad(w_kio.reshape(K * Cin, Cout),
                ((0, 0), (0, Cp - Cout))).astype(jnp.bfloat16)
    bp = jnp.pad(bias, (0, Cp - Cout)).reshape(1, Cp).astype(jnp.float32)

    out = pl.pallas_call(
        functools.partial(_conv_kernel, T=T),
        grid_spec=pltpu.PrefetchScalarGridSpec(
            num_scalar_prefetch=1,
            grid=(B,),
            in_specs=[
                pl.BlockSpec((1, T, K * Cin), lambda i, L: (i, 0, 0)),
                pl.BlockSpec((K * Cin, Cp), lambda i, L: (0, 0)),
                pl.BlockSpec((1, Cp), lambda i, L: (0, 0)),
            ],
            out_specs=pl.BlockSpec((1, T, Cp), lambda i, L: (i, 0, 0)),
        ),
        out_shape=jax.ShapeDtypeStruct((B, T, Cp), jnp.float32),
        compiler_params=pltpu.CompilerParams(
            dimension_semantics=("parallel",)),
    )(lengths, xc, w, bp)
    return out[:, :, :Cout]


def encoder_stack(h, lengths, params, *, num_heads, is_causal):
    """Whole TransformerEncoder in one pallas_call, grid=(B, num_layers)."""
    B, T, H = h.shape
    L = params["w_qkv"].shape[0]
    F = params["w_ff1"].shape[2]
    pe = positional_encoding(T, H)

    kernel = functools.partial(_encoder_kernel, T=T, H=H, NH=num_heads,
                               eps=1e-5, is_causal=is_causal)

    def wspec(shape):                               # per-layer weight stream
        return pl.BlockSpec(shape, lambda b, l, lens: (l, 0, 0))

    return pl.pallas_call(
        kernel,
        grid_spec=pltpu.PrefetchScalarGridSpec(
            num_scalar_prefetch=1,
            grid=(B, L),
            in_specs=[
                pl.BlockSpec((1, T, H), lambda b, l, lens: (b, 0, 0)),  # h
                pl.BlockSpec((T, H), lambda b, l, lens: (0, 0)),        # pe
                wspec((1, H, 3 * H)),     # w_qkv
                wspec((1, 1, 3 * H)),     # b_qkv
                wspec((1, H, H)),         # w_o
                wspec((1, 1, H)),         # b_o
                wspec((1, 1, H)),         # ln1_g
                wspec((1, 1, H)),         # ln1_b
                wspec((1, H, F)),         # w_ff1
                wspec((1, 1, F)),         # b_ff1
                wspec((1, F, H)),         # w_ff2
                wspec((1, 1, H)),         # b_ff2
                wspec((1, 1, H)),         # ln2_g
                wspec((1, 1, H)),         # ln2_b
            ],
            out_specs=pl.BlockSpec((1, T, H), lambda b, l, lens: (b, 0, 0)),
            scratch_shapes=[pltpu.VMEM((T, H), jnp.float32)],
        ),
        out_shape=jax.ShapeDtypeStruct((B, T, H), jnp.float32),
        compiler_params=pltpu.CompilerParams(
            dimension_semantics=("parallel", "arbitrary")),
    )(lengths, h, pe,
      params["w_qkv"].astype(jnp.bfloat16), params["b_qkv"],
      params["w_o"].astype(jnp.bfloat16), params["b_o"],
      params["ln1_g"], params["ln1_b"],
      params["w_ff1"].astype(jnp.bfloat16), params["b_ff1"],
      params["w_ff2"].astype(jnp.bfloat16), params["b_ff2"],
      params["ln2_g"], params["ln2_b"])


# ----------------------------------------------------------------------------
# Model glue (plain JAX): parameters, positional encoding, orchestration
# ----------------------------------------------------------------------------

def positional_encoding(T, H):
    pos = jnp.arange(T, dtype=jnp.float32)[:, None]
    freq = jnp.exp(jnp.arange(0, H, 2, dtype=jnp.float32)
                   * (-math.log(10000.0) / H))
    pe = jnp.zeros((T, H), jnp.float32)
    pe = pe.at[:, 0::2].set(jnp.sin(pos * freq))
    pe = pe.at[:, 1::2].set(jnp.cos(pos * freq))
    return pe


def init_params(key, *, num_layers, hidden, in_ch, out_ch, kernel_size,
                dim_ff):
    def nrm(k, shape, scale=0.05):
        return scale * jax.random.normal(k, shape, dtype=jnp.float32)

    L, H, F = num_layers, hidden, dim_ff
    keys = jax.random.split(key, 10)
    return {
        "in_w": nrm(keys[0], (kernel_size, in_ch, hidden)),
        "in_b": nrm(keys[1], (hidden,)),
        "out_w": nrm(keys[2], (kernel_size, hidden, out_ch)),
        "out_b": nrm(keys[3], (out_ch,)),
        # stacked per-layer encoder parameters (leading axis = layer)
        "w_qkv": nrm(keys[4], (L, H, 3 * H)),
        "b_qkv": jnp.zeros((L, 1, 3 * H), jnp.float32),
        "w_o": nrm(keys[5], (L, H, H)),
        "b_o": jnp.zeros((L, 1, H), jnp.float32),
        "ln1_g": jnp.ones((L, 1, H), jnp.float32),
        "ln1_b": jnp.zeros((L, 1, H), jnp.float32),
        "w_ff1": nrm(keys[6], (L, H, F)),
        "b_ff1": nrm(keys[7], (L, 1, F)),
        "w_ff2": nrm(keys[8], (L, F, H)),
        "b_ff2": nrm(keys[9], (L, 1, H)),
        "ln2_g": jnp.ones((L, 1, H), jnp.float32),
        "ln2_b": jnp.zeros((L, 1, H), jnp.float32),
    }


def transformer_forward(x, lengths, params, *, num_heads, is_causal=False):
    """x: (B, Cin, T) float32, lengths: (B,) int32 with max(lengths) == T."""
    xt = jnp.transpose(x, (0, 2, 1))                               # (B, T, Cin)
    h = conv1d_same(xt, params["in_w"], params["in_b"], lengths)    # (B, T, H)
    # positional encoding + full encoder stack fused in one pallas_call
    h = encoder_stack(h, lengths, params, num_heads=num_heads,
                      is_causal=is_causal)                          # (B, T, H)
    out = conv1d_same(h, params["out_w"], params["out_b"], lengths)  # (B,T,O)
    return jnp.transpose(out, (0, 2, 1))                             # (B,O,T)


# ----------------------------------------------------------------------------
# main
# ----------------------------------------------------------------------------

if __name__ == "__main__":
    B, Cin, T = 2, 16, 16
    HIDDEN, OUT, KSIZE, HEADS, LAYERS = 64, 8, 5, 4, 2
    DIM_FF = 2048  # torch.nn.TransformerEncoderLayer default

    key = jax.random.PRNGKey(0)
    k_x, k_p = jax.random.split(key)

    x = jax.random.normal(k_x, (B, Cin, T), dtype=jnp.float32)
    lengths = jnp.array([T, 11], dtype=jnp.int32)   # max(lengths) == T

    params = init_params(k_p, num_layers=LAYERS, hidden=HIDDEN, in_ch=Cin,
                         out_ch=OUT, kernel_size=KSIZE, dim_ff=DIM_FF)

    fwd = jax.jit(functools.partial(transformer_forward,
                                    num_heads=HEADS, is_causal=False))
    y = fwd(x, lengths, params)
    jax.block_until_ready(y)

    assert y.shape == (B, OUT, T), y.shape
    assert bool(jnp.all(jnp.isfinite(y)))
    print("KERNEL_OK")
</pallas_src>

<mosaic_0001>
module attributes {stable_mosaic.version = 11 : i64} {
  func.func @_conv_kernel(%arg0: i32, %arg1: memref<2xi32, #tpu.memory_space<smem>>, %arg2: memref<1x16x80xbf16, #tpu.memory_space<vmem>>, %arg3: memref<80x128xbf16, #tpu.memory_space<vmem>>, %arg4: memref<1x128xf32, #tpu.memory_space<vmem>>, %arg5: memref<1x16x128xf32, #tpu.memory_space<vmem>>) attributes {dimension_semantics = [#tpu.dimension_semantics<parallel>], iteration_bounds = array<i64: 2>, scalar_prefetch = 1 : i64, scratch_operands = 0 : i64, tpu.core_type = #tpu.core_type<tc>, window_params = [{transform_indices = @transform_0, window_bounds = array<i64: 1, 16, 80>}, {pipeline_mode = #tpu.pipeline_mode<synchronous>, transform_indices = @transform_1, window_bounds = array<i64: 80, 128>}, {pipeline_mode = #tpu.pipeline_mode<synchronous>, transform_indices = @transform_2, window_bounds = array<i64: 1, 128>}, {transform_indices = @transform_3, window_bounds = array<i64: 1, 16, 128>}]} {
    %0 = arith.index_cast %arg0 : i32 to index
    %1 = memref.load %arg1[%0] : memref<2xi32, #tpu.memory_space<smem>>
    %c0 = arith.constant 0 : index
    %c0_0 = arith.constant 0 : index
    %c0_1 = arith.constant 0 : index
    %2 = vector.load %arg2[%c0, %c0_0, %c0_1] : memref<1x16x80xbf16, #tpu.memory_space<vmem>>, vector<1x16x80xbf16>
    %3 = vector.shape_cast %2 : vector<1x16x80xbf16> to vector<16x80xbf16>
    %c0_2 = arith.constant 0 : index
    %c0_3 = arith.constant 0 : index
    %4 = vector.load %arg3[%c0_2, %c0_3] : memref<80x128xbf16, #tpu.memory_space<vmem>>, vector<80x128xbf16>
    %cst = arith.constant dense<0.000000e+00> : vector<16x128xf32>
    %5 = tpu.matmul %3, %4, %cst {dimension_numbers = #tpu.dot_dimension_numbers<[1], [0], [0], [1], [0, 0, 1, 1], [], []>} : vector<16x80xbf16>, vector<80x128xbf16>, vector<16x128xf32> -> vector<16x128xf32>
    %c0_4 = arith.constant 0 : index
    %c0_5 = arith.constant 0 : index
    %6 = vector.load %arg4[%c0_4, %c0_5] : memref<1x128xf32, #tpu.memory_space<vmem>>, vector<1x128xf32>
    %7 = vector.broadcast %6 : vector<1x128xf32> to vector<16x128xf32>
    %8 = arith.addf %5, %7 : vector<16x128xf32>
    %9 = tpu.iota {dimensions = array<i32: 0>} : vector<16x1xi32>
    %10 = vector.broadcast %1 : i32 to vector<16x1xi32>
    %11 = arith.cmpi slt, %9, %10 : vector<16x1xi32>
    %cst_6 = arith.constant 0.000000e+00 : f32
    %12 = vector.shape_cast %11 : vector<16x1xi1> to vector<16x1xi1>
    %13 = vector.broadcast %12 : vector<16x1xi1> to vector<16x128xi1>
    %14 = vector.broadcast %cst_6 : f32 to vector<16x128xf32>
    %15 = arith.select %13, %8, %14 : vector<16x128xi1>, vector<16x128xf32>
    %c0_7 = arith.constant 0 : index
    %c0_8 = arith.constant 0 : index
    %c0_9 = arith.constant 0 : index
    %16 = vector.load %arg5[%c0_7, %c0_8, %c0_9] : memref<1x16x128xf32, #tpu.memory_space<vmem>>, vector<1x16x128xf32>
    %17 = vector.shape_cast %16 : vector<1x16x128xf32> to vector<16x128xf32>
    %18 = vector.shape_cast %15 : vector<16x128xf32> to vector<1x16x128xf32>
    tpu.vector_store %arg5[%c0_7, %c0_8, %c0_9], %18 {strides = array<i32>} : memref<1x16x128xf32, #tpu.memory_space<vmem>>, vector<1x16x128xf32>,
    return
  }
  func.func @transform_0(%arg0: i32, %arg1: memref<2xi32, #tpu.memory_space<smem>>) -> (i32, i32, i32) {
    %c0_i32 = arith.constant 0 : i32
    %c0_i32_0 = arith.constant 0 : i32
    %c0_i32_1 = arith.constant 0 : i32
    return %arg0, %c0_i32, %c0_i32_0 : i32, i32, i32
  }
  func.func @transform_1(%arg0: i32, %arg1: memref<2xi32, #tpu.memory_space<smem>>) -> (i32, i32) {
    %c0_i32 = arith.constant 0 : i32
    %c0_i32_0 = arith.constant 0 : i32
    %c0_i32_1 = arith.constant 0 : i32
    return %c0_i32, %c0_i32_0 : i32, i32
  }
  func.func @transform_2(%arg0: i32, %arg1: memref<2xi32, #tpu.memory_space<smem>>) -> (i32, i32) {
    %c0_i32 = arith.constant 0 : i32
    %c0_i32_0 = arith.constant 0 : i32
    %c0_i32_1 = arith.constant 0 : i32
    return %c0_i32, %c0_i32_0 : i32, i32
  }
  func.func @transform_3(%arg0: i32, %arg1: memref<2xi32, #tpu.memory_space<smem>>) -> (i32, i32, i32) {
    %c0_i32 = arith.constant 0 : i32
    %c0_i32_0 = arith.constant 0 : i32
    %c0_i32_1 = arith.constant 0 : i32
    return %arg0, %c0_i32, %c0_i32_0 : i32, i32, i32
  }
}

module attributes {stable_mosaic.version = 11 : i64} {
  func.func @_encoder_kernel(%arg0: i32, %arg1: i32, %arg2: memref<2xi32, #tpu.memory_space<smem>>, %arg3: memref<1x16x64xf32, #tpu.memory_space<vmem>>, %arg4: memref<16x64xf32, #tpu.memory_space<vmem>>, %arg5: memref<1x64x192xbf16, #tpu.memory_space<vmem>>, %arg6: memref<1x1x192xf32, #tpu.memory_space<vmem>>, %arg7: memref<1x64x64xbf16, #tpu.memory_space<vmem>>, %arg8: memref<1x1x64xf32, #tpu.memory_space<vmem>>, %arg9: memref<1x1x64xf32, #tpu.memory_space<vmem>>, %arg10: memref<1x1x64xf32, #tpu.memory_space<vmem>>, %arg11: memref<1x64x2048xbf16, #tpu.memory_space<vmem>>, %arg12: memref<1x1x2048xf32, #tpu.memory_space<vmem>>, %arg13: memref<1x2048x64xbf16, #tpu.memory_space<vmem>>, %arg14: memref<1x1x64xf32, #tpu.memory_space<vmem>>, %arg15: memref<1x1x64xf32, #tpu.memory_space<vmem>>, %arg16: memref<1x1x64xf32, #tpu.memory_space<vmem>>, %arg17: memref<1x16x64xf32, #tpu.memory_space<vmem>>, %arg18: memref<16x64xf32, #tpu.memory_space<vmem>>) attributes {dimension_semantics = [#tpu.dimension_semantics<parallel>, #tpu.dimension_semantics<arbitrary>], iteration_bounds = array<i64: 2, 2>, scalar_prefetch = 1 : i64, scratch_operands = 1 : i64, tpu.core_type = #tpu.core_type<tc>, window_params = [{transform_indices = @transform_0, window_bounds = array<i64: 1, 16, 64>}, {pipeline_mode = #tpu.pipeline_mode<synchronous>, transform_indices = @transform_1, window_bounds = array<i64: 16, 64>}, {transform_indices = @transform_2, window_bounds = array<i64: 1, 64, 192>}, {transform_indices = @transform_3, window_bounds = array<i64: 1, 1, 192>}, {transform_indices = @transform_4, window_bounds = array<i64: 1, 64, 64>}, {transform_indices = @transform_5, window_bounds = array<i64: 1, 1, 64>}, {transform_indices = @transform_6, window_bounds = array<i64: 1, 1, 64>}, {transform_indices = @transform_7, window_bounds = array<i64: 1, 1, 64>}, {transform_indices = @transform_8, window_bounds = array<i64: 1, 64, 2048>}, {transform_indices = @transform_9, window_bounds = array<i64: 1, 1, 2048>}, {transform_indices = @transform_10, window_bounds = array<i64: 1, 2048, 64>}, {transform_indices = @transform_11, window_bounds = array<i64: 1, 1, 64>}, {transform_indices = @transform_12, window_bounds = array<i64: 1, 1, 64>}, {transform_indices = @transform_13, window_bounds = array<i64: 1, 1, 64>}, {transform_indices = @transform_14, window_bounds = array<i64: 1, 16, 64>}]} {
    %0 = arith.index_cast %arg0 : i32 to index
    %1 = memref.load %arg2[%0] : memref<2xi32, #tpu.memory_space<smem>>
    %c0_i32 = arith.constant 0 : i32
    %2 = arith.cmpi eq, %arg1, %c0_i32 : i32
    %3 = arith.extui %2 : i1 to i32
    %c0_i32_0 = arith.constant 0 : i32
    %4 = arith.cmpi ne, %3, %c0_i32_0 : i32
    scf.if %4 {
      %c0_81 = arith.constant 0 : index
      %c0_82 = arith.constant 0 : index
      %c0_83 = arith.constant 0 : index
      %200 = vector.load %arg3[%c0_81, %c0_82, %c0_83] : memref<1x16x64xf32, #tpu.memory_space<vmem>>, vector<1x16x64xf32>
      %201 = vector.shape_cast %200 : vector<1x16x64xf32> to vector<16x64xf32>
      %c0_84 = arith.constant 0 : index
      %c0_85 = arith.constant 0 : index
      %202 = vector.load %arg4[%c0_84, %c0_85] : memref<16x64xf32, #tpu.memory_space<vmem>>, vector<16x64xf32>
      %203 = arith.addf %201, %202 : vector<16x64xf32>
      %c0_86 = arith.constant 0 : index
      %c0_87 = arith.constant 0 : index
      %204 = vector.load %arg18[%c0_86, %c0_87] : memref<16x64xf32, #tpu.memory_space<vmem>>, vector<16x64xf32>
      tpu.vector_store %arg18[%c0_86, %c0_87], %203 {strides = array<i32>} : memref<16x64xf32, #tpu.memory_space<vmem>>, vector<16x64xf32>,
    } else {
    }
    %c0 = arith.constant 0 : index
    %c0_1 = arith.constant 0 : index
    %5 = vector.load %arg18[%c0, %c0_1] : memref<16x64xf32, #tpu.memory_space<vmem>>, vector<16x64xf32>
    %6 = arith.truncf %5 : vector<16x64xf32> to vector<16x64xbf16>
    %c0_2 = arith.constant 0 : index
    %c0_3 = arith.constant 0 : index
    %c0_4 = arith.constant 0 : index
    %7 = vector.load %arg5[%c0_2, %c0_3, %c0_4] : memref<1x64x192xbf16, #tpu.memory_space<vmem>>, vector<1x64x192xbf16>
    %8 = vector.shape_cast %7 : vector<1x64x192xbf16> to vector<64x192xbf16>
    %cst = arith.constant dense<0.000000e+00> : vector<16x192xf32>
    %9 = tpu.matmul %6, %8, %cst {dimension_numbers = #tpu.dot_dimension_numbers<[1], [0], [0], [1], [0, 0, 1, 1], [], []>} : vector<16x64xbf16>, vector<64x192xbf16>, vector<16x192xf32> -> vector<16x192xf32>
    %c0_5 = arith.constant 0 : index
    %c0_6 = arith.constant 0 : index
    %c0_7 = arith.constant 0 : index
    %10 = vector.load %arg6[%c0_5, %c0_6, %c0_7] : memref<1x1x192xf32, #tpu.memory_space<vmem>>, vector<1x1x192xf32>
    %11 = vector.shape_cast %10 : vector<1x1x192xf32> to vector<1x192xf32>
    %12 = vector.broadcast %11 : vector<1x192xf32> to vector<16x192xf32>
    %13 = arith.addf %9, %12 : vector<16x192xf32>
    %14 = arith.truncf %13 : vector<16x192xf32> to vector<16x192xbf16>
    %15 = tpu.iota {dimensions = array<i32: 1>} : vector<1x16xi32>
    %16 = vector.broadcast %1 : i32 to vector<1x16xi32>
    %17 = arith.cmpi sge, %15, %16 : vector<1x16xi32>
    %cst_8 = arith.constant -1.000000e+09 : f32
    %cst_9 = arith.constant 0.000000e+00 : f32
    %18 = vector.broadcast %cst_8 : f32 to vector<1x16xf32>
    %19 = vector.broadcast %cst_9 : f32 to vector<1x16xf32>
    %20 = arith.select %17, %18, %19 : vector<1x16xi1>, vector<1x16xf32>
    %c0_10 = arith.constant 0 : index
    %c0_11 = arith.constant 0 : index
    %c0_12 = arith.constant 0 : index
    %21 = vector.load %arg7[%c0_10, %c0_11, %c0_12] : memref<1x64x64xbf16, #tpu.memory_space<vmem>>, vector<1x64x64xbf16>
    %22 = vector.shape_cast %21 : vector<1x64x64xbf16> to vector<64x64xbf16>
    %cst_13 = arith.constant 0.000000e+00 : f32
    %23 = vector.broadcast %cst_13 : f32 to vector<16x64xf32>
    %24 = vector.extract_strided_slice %14 {offsets = [0, 0], sizes = [16, 16], strides = [1, 1]} : vector<16x192xbf16> to vector<16x16xbf16>
    %25 = vector.extract_strided_slice %14 {offsets = [0, 64], sizes = [16, 16], strides = [1, 1]} : vector<16x192xbf16> to vector<16x16xbf16>
    %26 = vector.extract_strided_slice %14 {offsets = [0, 128], sizes = [16, 16], strides = [1, 1]} : vector<16x192xbf16> to vector<16x16xbf16>
    %cst_14 = arith.constant dense<0.000000e+00> : vector<16x16xf32>
    %27 = tpu.matmul %24, %25, %cst_14 {dimension_numbers = #tpu.dot_dimension_numbers<[1], [1], [0], [0], [0, 0, 1, 0], [], []>} : vector<16x16xbf16>, vector<16x16xbf16>, vector<16x16xf32> -> vector<16x16xf32>
    %cst_15 = arith.constant 2.500000e-01 : f32
    %28 = vector.broadcast %cst_15 : f32 to vector<16x16xf32>
    %29 = arith.mulf %27, %28 : vector<16x16xf32>
    %30 = vector.broadcast %20 : vector<1x16xf32> to vector<16x16xf32>
    %31 = arith.addf %29, %30 : vector<16x16xf32>
    %cst_16 = arith.constant dense<0xFF800000> : vector<16xf32>
    %32 = vector.multi_reduction <maximumf>, %31, %cst_16 [1] : vector<16x16xf32> to vector<16xf32>
    %33 = vector.shape_cast %32 : vector<16xf32> to vector<16x1xf32>
    %34 = vector.broadcast %33 : vector<16x1xf32> to vector<16x16xf32>
    %35 = arith.subf %31, %34 : vector<16x16xf32>
    %36 = math.exp %35 : vector<16x16xf32>
    %cst_17 = arith.constant dense<0.000000e+00> : vector<16xf32>
    %37 = vector.multi_reduction <add>, %36, %cst_17 [1] : vector<16x16xf32> to vector<16xf32>
    %38 = vector.shape_cast %37 : vector<16xf32> to vector<16x1xf32>
    %39 = tpu.reciprocal %38 {approx = true} : vector<16x1xf32> -> vector<16x1xf32>
    %40 = vector.broadcast %39 : vector<16x1xf32> to vector<16x16xf32>
    %41 = arith.mulf %36, %40 : vector<16x16xf32>
    %42 = arith.truncf %41 : vector<16x16xf32> to vector<16x16xbf16>
    %cst_18 = arith.constant dense<0.000000e+00> : vector<16x16xf32>
    %43 = tpu.matmul %42, %26, %cst_18 {dimension_numbers = #tpu.dot_dimension_numbers<[1], [0], [0], [1], [0, 0, 1, 1], [], []>} : vector<16x16xbf16>, vector<16x16xbf16>, vector<16x16xf32> -> vector<16x16xf32>
    %44 = arith.truncf %43 : vector<16x16xf32> to vector<16x16xbf16>
    %45 = vector.extract_strided_slice %22 {offsets = [0, 0], sizes = [16, 64], strides = [1, 1]} : vector<64x64xbf16> to vector<16x64xbf16>
    %cst_19 = arith.constant dense<0.000000e+00> : vector<16x64xf32>
    %46 = tpu.matmul %44, %45, %cst_19 {dimension_numbers = #tpu.dot_dimension_numbers<[1], [0], [0], [1], [0, 0, 1, 1], [], []>} : vector<16x16xbf16>, vector<16x64xbf16>, vector<16x64xf32> -> vector<16x64xf32>
    %47 = arith.addf %23, %46 : vector<16x64xf32>
    %48 = vector.extract_strided_slice %14 {offsets = [0, 16], sizes = [16, 16], strides = [1, 1]} : vector<16x192xbf16> to vector<16x16xbf16>
    %49 = vector.extract_strided_slice %14 {offsets = [0, 80], sizes = [16, 16], strides = [1, 1]} : vector<16x192xbf16> to vector<16x16xbf16>
    %50 = vector.extract_strided_slice %14 {offsets = [0, 144], sizes = [16, 16], strides = [1, 1]} : vector<16x192xbf16> to vector<16x16xbf16>
    %cst_20 = arith.constant dense<0.000000e+00> : vector<16x16xf32>
    %51 = tpu.matmul %48, %49, %cst_20 {dimension_numbers = #tpu.dot_dimension_numbers<[1], [1], [0], [0], [0, 0, 1, 0], [], []>} : vector<16x16xbf16>, vector<16x16xbf16>, vector<16x16xf32> -> vector<16x16xf32>
    %cst_21 = arith.constant 2.500000e-01 : f32
    %52 = vector.broadcast %cst_21 : f32 to vector<16x16xf32>
    %53 = arith.mulf %51, %52 : vector<16x16xf32>
    %54 = vector.broadcast %20 : vector<1x16xf32> to vector<16x16xf32>
    %55 = arith.addf %53, %54 : vector<16x16xf32>
    %cst_22 = arith.constant dense<0xFF800000> : vector<16xf32>
    %56 = vector.multi_reduction <maximumf>, %55, %cst_22 [1] : vector<16x16xf32> to vector<16xf32>
    %57 = vector.shape_cast %56 : vector<16xf32> to vector<16x1xf32>
    %58 = vector.broadcast %57 : vector<16x1xf32> to vector<16x16xf32>
    %59 = arith.subf %55, %58 : vector<16x16xf32>
    %60 = math.exp %59 : vector<16x16xf32>
    %cst_23 = arith.constant dense<0.000000e+00> : vector<16xf32>
    %61 = vector.multi_reduction <add>, %60, %cst_23 [1] : vector<16x16xf32> to vector<16xf32>
    %62 = vector.shape_cast %61 : vector<16xf32> to vector<16x1xf32>
    %63 = tpu.reciprocal %62 {approx = true} : vector<16x1xf32> -> vector<16x1xf32>
    %64 = vector.broadcast %63 : vector<16x1xf32> to vector<16x16xf32>
    %65 = arith.mulf %60, %64 : vector<16x16xf32>
    %66 = arith.truncf %65 : vector<16x16xf32> to vector<16x16xbf16>
    %cst_24 = arith.constant dense<0.000000e+00> : vector<16x16xf32>
    %67 = tpu.matmul %66, %50, %cst_24 {dimension_numbers = #tpu.dot_dimension_numbers<[1], [0], [0], [1], [0, 0, 1, 1], [], []>} : vector<16x16xbf16>, vector<16x16xbf16>, vector<16x16xf32> -> vector<16x16xf32>
    %68 = arith.truncf %67 : vector<16x16xf32> to vector<16x16xbf16>
    %69 = vector.extract_strided_slice %22 {offsets = [16, 0], sizes = [16, 64], strides = [1, 1]} : vector<64x64xbf16> to vector<16x64xbf16>
    %cst_25 = arith.constant dense<0.000000e+00> : vector<16x64xf32>
    %70 = tpu.matmul %68, %69, %cst_25 {dimension_numbers = #tpu.dot_dimension_numbers<[1], [0], [0], [1], [0, 0, 1, 1], [], []>} : vector<16x16xbf16>, vector<16x64xbf16>, vector<16x64xf32> -> vector<16x64xf32>
    %71 = arith.addf %47, %70 : vector<16x64xf32>
    %72 = vector.extract_strided_slice %14 {offsets = [0, 32], sizes = [16, 16], strides = [1, 1]} : vector<16x192xbf16> to vector<16x16xbf16>
    %73 = vector.extract_strided_slice %14 {offsets = [0, 96], sizes = [16, 16], strides = [1, 1]} : vector<16x192xbf16> to vector<16x16xbf16>
    %74 = vector.extract_strided_slice %14 {offsets = [0, 160], sizes = [16, 16], strides = [1, 1]} : vector<16x192xbf16> to vector<16x16xbf16>
    %cst_26 = arith.constant dense<0.000000e+00> : vector<16x16xf32>
    %75 = tpu.matmul %72, %73, %cst_26 {dimension_numbers = #tpu.dot_dimension_numbers<[1], [1], [0], [0], [0, 0, 1, 0], [], []>} : vector<16x16xbf16>, vector<16x16xbf16>, vector<16x16xf32> -> vector<16x16xf32>
    %cst_27 = arith.constant 2.500000e-01 : f32
    %76 = vector.broadcast %cst_27 : f32 to vector<16x16xf32>
    %77 = arith.mulf %75, %76 : vector<16x16xf32>
    %78 = vector.broadcast %20 : vector<1x16xf32> to vector<16x16xf32>
    %79 = arith.addf %77, %78 : vector<16x16xf32>
    %cst_28 = arith.constant dense<0xFF800000> : vector<16xf32>
    %80 = vector.multi_reduction <maximumf>, %79, %cst_28 [1] : vector<16x16xf32> to vector<16xf32>
    %81 = vector.shape_cast %80 : vector<16xf32> to vector<16x1xf32>
    %82 = vector.broadcast %81 : vector<16x1xf32> to vector<16x16xf32>
    %83 = arith.subf %79, %82 : vector<16x16xf32>
    %84 = math.exp %83 : vector<16x16xf32>
    %cst_29 = arith.constant dense<0.000000e+00> : vector<16xf32>
    %85 = vector.multi_reduction <add>, %84, %cst_29 [1] : vector<16x16xf32> to vector<16xf32>
    %86 = vector.shape_cast %85 : vector<16xf32> to vector<16x1xf32>
    %87 = tpu.reciprocal %86 {approx = true} : vector<16x1xf32> -> vector<16x1xf32>
    %88 = vector.broadcast %87 : vector<16x1xf32> to vector<16x16xf32>
    %89 = arith.mulf %84, %88 : vector<16x16xf32>
    %90 = arith.truncf %89 : vector<16x16xf32> to vector<16x16xbf16>
    %cst_30 = arith.constant dense<0.000000e+00> : vector<16x16xf32>
    %91 = tpu.matmul %90, %74, %cst_30 {dimension_numbers = #tpu.dot_dimension_numbers<[1], [0], [0], [1], [0, 0, 1, 1], [], []>} : vector<16x16xbf16>, vector<16x16xbf16>, vector<16x16xf32> -> vector<16x16xf32>
    %92 = arith.truncf %91 : vector<16x16xf32> to vector<16x16xbf16>
    %93 = vector.extract_strided_slice %22 {offsets = [32, 0], sizes = [16, 64], strides = [1, 1]} : vector<64x64xbf16> to vector<16x64xbf16>
    %cst_31 = arith.constant dense<0.000000e+00> : vector<16x64xf32>
    %94 = tpu.matmul %92, %93, %cst_31 {dimension_numbers = #tpu.dot_dimension_numbers<[1], [0], [0], [1], [0, 0, 1, 1], [], []>} : vector<16x16xbf16>, vector<16x64xbf16>, vector<16x64xf32> -> vector<16x64xf32>
    %95 = arith.addf %71, %94 : vector<16x64xf32>
    %96 = vector.extract_strided_slice %14 {offsets = [0, 48], sizes = [16, 16], strides = [1, 1]} : vector<16x192xbf16> to vector<16x16xbf16>
    %97 = vector.extract_strided_slice %14 {offsets = [0, 112], sizes = [16, 16], strides = [1, 1]} : vector<16x192xbf16> to vector<16x16xbf16>
    %98 = vector.extract_strided_slice %14 {offsets = [0, 176], sizes = [16, 16], strides = [1, 1]} : vector<16x192xbf16> to vector<16x16xbf16>
    %cst_32 = arith.constant dense<0.000000e+00> : vector<16x16xf32>
    %99 = tpu.matmul %96, %97, %cst_32 {dimension_numbers = #tpu.dot_dimension_numbers<[1], [1], [0], [0], [0, 0, 1, 0], [], []>} : vector<16x16xbf16>, vector<16x16xbf16>, vector<16x16xf32> -> vector<16x16xf32>
    %cst_33 = arith.constant 2.500000e-01 : f32
    %100 = vector.broadcast %cst_33 : f32 to vector<16x16xf32>
    %101 = arith.mulf %99, %100 : vector<16x16xf32>
    %102 = vector.broadcast %20 : vector<1x16xf32> to vector<16x16xf32>
    %103 = arith.addf %101, %102 : vector<16x16xf32>
    %cst_34 = arith.constant dense<0xFF800000> : vector<16xf32>
    %104 = vector.multi_reduction <maximumf>, %103, %cst_34 [1] : vector<16x16xf32> to vector<16xf32>
    %105 = vector.shape_cast %104 : vector<16xf32> to vector<16x1xf32>
    %106 = vector.broadcast %105 : vector<16x1xf32> to vector<16x16xf32>
    %107 = arith.subf %103, %106 : vector<16x16xf32>
    %108 = math.exp %107 : vector<16x16xf32>
    %cst_35 = arith.constant dense<0.000000e+00> : vector<16xf32>
    %109 = vector.multi_reduction <add>, %108, %cst_35 [1] : vector<16x16xf32> to vector<16xf32>
    %110 = vector.shape_cast %109 : vector<16xf32> to vector<16x1xf32>
    %111 = tpu.reciprocal %110 {approx = true} : vector<16x1xf32> -> vector<16x1xf32>
    %112 = vector.broadcast %111 : vector<16x1xf32> to vector<16x16xf32>
    %113 = arith.mulf %108, %112 : vector<16x16xf32>
    %114 = arith.truncf %113 : vector<16x16xf32> to vector<16x16xbf16>
    %cst_36 = arith.constant dense<0.000000e+00> : vector<16x16xf32>
    %115 = tpu.matmul %114, %98, %cst_36 {dimension_numbers = #tpu.dot_dimension_numbers<[1], [0], [0], [1], [0, 0, 1, 1], [], []>} : vector<16x16xbf16>, vector<16x16xbf16>, vector<16x16xf32> -> vector<16x16xf32>
    %116 = arith.truncf %115 : vector<16x16xf32> to vector<16x16xbf16>
    %117 = vector.extract_strided_slice %22 {offsets = [48, 0], sizes = [16, 64], strides = [1, 1]} : vector<64x64xbf16> to vector<16x64xbf16>
    %cst_37 = arith.constant dense<0.000000e+00> : vector<16x64xf32>
    %118 = tpu.matmul %116, %117, %cst_37 {dimension_numbers = #tpu.dot_dimension_numbers<[1], [0], [0], [1], [0, 0, 1, 1], [], []>} : vector<16x16xbf16>, vector<16x64xbf16>, vector<16x64xf32> -> vector<16x64xf32>
    %119 = arith.addf %95, %118 : vector<16x64xf32>
    %120 = arith.addf %5, %119 : vector<16x64xf32>
    %c0_38 = arith.constant 0 : index
    %c0_39 = arith.constant 0 : index
    %c0_40 = arith.constant 0 : index
    %121 = vector.load %arg8[%c0_38, %c0_39, %c0_40] : memref<1x1x64xf32, #tpu.memory_space<vmem>>, vector<1x1x64xf32>
    %122 = vector.shape_cast %121 : vector<1x1x64xf32> to vector<1x64xf32>
    %123 = vector.broadcast %122 : vector<1x64xf32> to vector<16x64xf32>
    %124 = arith.addf %120, %123 : vector<16x64xf32>
    %cst_41 = arith.constant dense<0.000000e+00> : vector<16xf32>
    %125 = vector.multi_reduction <add>, %124, %cst_41 [1] : vector<16x64xf32> to vector<16xf32>
    %126 = vector.shape_cast %125 : vector<16xf32> to vector<16x1xf32>
    %cst_42 = arith.constant 6.400000e+01 : f32
    %127 = vector.broadcast %cst_42 : f32 to vector<16x1xf32>
    %128 = arith.divf %126, %127 : vector<16x1xf32>
    %129 = vector.broadcast %128 : vector<16x1xf32> to vector<16x64xf32>
    %130 = arith.subf %124, %129 : vector<16x64xf32>
    %131 = arith.mulf %130, %130 : vector<16x64xf32>
    %cst_43 = arith.constant dense<0.000000e+00> : vector<16xf32>
    %132 = vector.multi_reduction <add>, %131, %cst_43 [1] : vector<16x64xf32> to vector<16xf32>
    %133 = vector.shape_cast %132 : vector<16xf32> to vector<16x1xf32>
    %cst_44 = arith.constant 6.400000e+01 : f32
    %134 = vector.broadcast %cst_44 : f32 to vector<16x1xf32>
    %135 = arith.divf %133, %134 : vector<16x1xf32>
    %136 = vector.broadcast %128 : vector<16x1xf32> to vector<16x64xf32>
    %137 = arith.subf %124, %136 : vector<16x64xf32>
    %cst_45 = arith.constant 9.99999974E-6 : f32
    %138 = vector.broadcast %cst_45 : f32 to vector<16x1xf32>
    %139 = arith.addf %135, %138 : vector<16x1xf32>
    %140 = math.rsqrt %139 : vector<16x1xf32>
    %141 = vector.broadcast %140 : vector<16x1xf32> to vector<16x64xf32>
    %142 = arith.mulf %137, %141 : vector<16x64xf32>
    %c0_46 = arith.constant 0 : index
    %c0_47 = arith.constant 0 : index
    %c0_48 = arith.constant 0 : index
    %143 = vector.load %arg9[%c0_46, %c0_47, %c0_48] : memref<1x1x64xf32, #tpu.memory_space<vmem>>, vector<1x1x64xf32>
    %144 = vector.shape_cast %143 : vector<1x1x64xf32> to vector<1x64xf32>
    %145 = vector.broadcast %144 : vector<1x64xf32> to vector<16x64xf32>
    %146 = arith.mulf %142, %145 : vector<16x64xf32>
    %c0_49 = arith.constant 0 : index
    %c0_50 = arith.constant 0 : index
    %c0_51 = arith.constant 0 : index
    %147 = vector.load %arg10[%c0_49, %c0_50, %c0_51] : memref<1x1x64xf32, #tpu.memory_space<vmem>>, vector<1x1x64xf32>
    %148 = vector.shape_cast %147 : vector<1x1x64xf32> to vector<1x64xf32>
    %149 = vector.broadcast %148 : vector<1x64xf32> to vector<16x64xf32>
    %150 = arith.addf %146, %149 : vector<16x64xf32>
    %151 = arith.truncf %150 : vector<16x64xf32> to vector<16x64xbf16>
    %c0_52 = arith.constant 0 : index
    %c0_53 = arith.constant 0 : index
    %c0_54 = arith.constant 0 : index
    %152 = vector.load %arg11[%c0_52, %c0_53, %c0_54] : memref<1x64x2048xbf16, #tpu.memory_space<vmem>>, vector<1x64x2048xbf16>
    %153 = vector.shape_cast %152 : vector<1x64x2048xbf16> to vector<64x2048xbf16>
    %cst_55 = arith.constant dense<0.000000e+00> : vector<16x2048xf32>
    %154 = tpu.matmul %151, %153, %cst_55 {dimension_numbers = #tpu.dot_dimension_numbers<[1], [0], [0], [1], [0, 0, 1, 1], [], []>} : vector<16x64xbf16>, vector<64x2048xbf16>, vector<16x2048xf32> -> vector<16x2048xf32>
    %c0_56 = arith.constant 0 : index
    %c0_57 = arith.constant 0 : index
    %c0_58 = arith.constant 0 : index
    %155 = vector.load %arg12[%c0_56, %c0_57, %c0_58] : memref<1x1x2048xf32, #tpu.memory_space<vmem>>, vector<1x1x2048xf32>
    %156 = vector.shape_cast %155 : vector<1x1x2048xf32> to vector<1x2048xf32>
    %157 = vector.broadcast %156 : vector<1x2048xf32> to vector<16x2048xf32>
    %158 = arith.addf %154, %157 : vector<16x2048xf32>
    %cst_59 = arith.constant 0.000000e+00 : f32
    %159 = vector.broadcast %cst_59 : f32 to vector<16x2048xf32>
    %160 = arith.maximumf %158, %159 : vector<16x2048xf32>
    %161 = arith.truncf %160 : vector<16x2048xf32> to vector<16x2048xbf16>
    %c0_60 = arith.constant 0 : index
    %c0_61 = arith.constant 0 : index
    %c0_62 = arith.constant 0 : index
    %162 = vector.load %arg13[%c0_60, %c0_61, %c0_62] : memref<1x2048x64xbf16, #tpu.memory_space<vmem>>, vector<1x2048x64xbf16>
    %163 = vector.shape_cast %162 : vector<1x2048x64xbf16> to vector<2048x64xbf16>
    %cst_63 = arith.constant dense<0.000000e+00> : vector<16x64xf32>
    %164 = tpu.matmul %161, %163, %cst_63 {dimension_numbers = #tpu.dot_dimension_numbers<[1], [0], [0], [1], [0, 0, 1, 1], [], []>} : vector<16x2048xbf16>, vector<2048x64xbf16>, vector<16x64xf32> -> vector<16x64xf32>
    %c0_64 = arith.constant 0 : index
    %c0_65 = arith.constant 0 : index
    %c0_66 = arith.constant 0 : index
    %165 = vector.load %arg14[%c0_64, %c0_65, %c0_66] : memref<1x1x64xf32, #tpu.memory_space<vmem>>, vector<1x1x64xf32>
    %166 = vector.shape_cast %165 : vector<1x1x64xf32> to vector<1x64xf32>
    %167 = vector.broadcast %166 : vector<1x64xf32> to vector<16x64xf32>
    %168 = arith.addf %164, %167 : vector<16x64xf32>
    %169 = arith.addf %150, %168 : vector<16x64xf32>
    %cst_67 = arith.constant dense<0.000000e+00> : vector<16xf32>
    %170 = vector.multi_reduction <add>, %169, %cst_67 [1] : vector<16x64xf32> to vector<16xf32>
    %171 = vector.shape_cast %170 : vector<16xf32> to vector<16x1xf32>
    %cst_68 = arith.constant 6.400000e+01 : f32
    %172 = vector.broadcast %cst_68 : f32 to vector<16x1xf32>
    %173 = arith.divf %171, %172 : vector<16x1xf32>
    %174 = vector.broadcast %173 : vector<16x1xf32> to vector<16x64xf32>
    %175 = arith.subf %169, %174 : vector<16x64xf32>
    %176 = arith.mulf %175, %175 : vector<16x64xf32>
    %cst_69 = arith.constant dense<0.000000e+00> : vector<16xf32>
    %177 = vector.multi_reduction <add>, %176, %cst_69 [1] : vector<16x64xf32> to vector<16xf32>
    %178 = vector.shape_cast %177 : vector<16xf32> to vector<16x1xf32>
    %cst_70 = arith.constant 6.400000e+01 : f32
    %179 = vector.broadcast %cst_70 : f32 to vector<16x1xf32>
    %180 = arith.divf %178, %179 : vector<16x1xf32>
    %181 = vector.broadcast %173 : vector<16x1xf32> to vector<16x64xf32>
    %182 = arith.subf %169, %181 : vector<16x64xf32>
    %cst_71 = arith.constant 9.99999974E-6 : f32
    %183 = vector.broadcast %cst_71 : f32 to vector<16x1xf32>
    %184 = arith.addf %180, %183 : vector<16x1xf32>
    %185 = math.rsqrt %184 : vector<16x1xf32>
    %186 = vector.broadcast %185 : vector<16x1xf32> to vector<16x64xf32>
    %187 = arith.mulf %182, %186 : vector<16x64xf32>
    %c0_72 = arith.constant 0 : index
    %c0_73 = arith.constant 0 : index
    %c0_74 = arith.constant 0 : index
    %188 = vector.load %arg15[%c0_72, %c0_73, %c0_74] : memref<1x1x64xf32, #tpu.memory_space<vmem>>, vector<1x1x64xf32>
    %189 = vector.shape_cast %188 : vector<1x1x64xf32> to vector<1x64xf32>
    %190 = vector.broadcast %189 : vector<1x64xf32> to vector<16x64xf32>
    %191 = arith.mulf %187, %190 : vector<16x64xf32>
    %c0_75 = arith.constant 0 : index
    %c0_76 = arith.constant 0 : index
    %c0_77 = arith.constant 0 : index
    %192 = vector.load %arg16[%c0_75, %c0_76, %c0_77] : memref<1x1x64xf32, #tpu.memory_space<vmem>>, vector<1x1x64xf32>
    %193 = vector.shape_cast %192 : vector<1x1x64xf32> to vector<1x64xf32>
    %194 = vector.broadcast %193 : vector<1x64xf32> to vector<16x64xf32>
    %195 = arith.addf %191, %194 : vector<16x64xf32>
    %c0_78 = arith.constant 0 : index
    %c0_79 = arith.constant 0 : index
    %196 = vector.load %arg18[%c0_78, %c0_79] : memref<16x64xf32, #tpu.memory_space<vmem>>, vector<16x64xf32>
    tpu.vector_store %arg18[%c0_78, %c0_79], %195 {strides = array<i32>} : memref<16x64xf32, #tpu.memory_space<vmem>>, vector<16x64xf32>,
    %c1_i32 = arith.constant 1 : i32
    %197 = arith.cmpi eq, %arg1, %c1_i32 : i32
    %198 = arith.extui %197 : i1 to i32
    %c0_i32_80 = arith.constant 0 : i32
    %199 = arith.cmpi ne, %198, %c0_i32_80 : i32
    scf.if %199 {
      %c0_81 = arith.constant 0 : index
      %c0_82 = arith.constant 0 : index
      %c0_83 = arith.constant 0 : index
      %200 = vector.load %arg17[%c0_81, %c0_82, %c0_83] : memref<1x16x64xf32, #tpu.memory_space<vmem>>, vector<1x16x64xf32>
      %201 = vector.shape_cast %200 : vector<1x16x64xf32> to vector<16x64xf32>
      %202 = vector.shape_cast %195 : vector<16x64xf32> to vector<1x16x64xf32>
      tpu.vector_store %arg17[%c0_81, %c0_82, %c0_83], %202 {strides = array<i32>} : memref<1x16x64xf32, #tpu.memory_space<vmem>>, vector<1x16x64xf32>,
    } else {
    }
    return
  }
  func.func @transform_0(%arg0: i32, %arg1: i32, %arg2: memref<2xi32, #tpu.memory_space<smem>>) -> (i32, i32, i32) {
    %c0_i32 = arith.constant 0 : i32
    %c0_i32_0 = arith.constant 0 : i32
    %c0_i32_1 = arith.constant 0 : i32
    return %arg0, %c0_i32, %c0_i32_0 : i32, i32, i32
  }
  func.func @transform_1(%arg0: i32, %arg1: i32, %arg2: memref<2xi32, #tpu.memory_space<smem>>) -> (i32, i32) {
    %c0_i32 = arith.constant 0 : i32
    %c0_i32_0 = arith.constant 0 : i32
    %c0_i32_1 = arith.constant 0 : i32
    return %c0_i32, %c0_i32_0 : i32, i32
  }
  func.func @transform_2(%arg0: i32, %arg1: i32, %arg2: memref<2xi32, #tpu.memory_space<smem>>) -> (i32, i32, i32) {
    %c0_i32 = arith.constant 0 : i32
    %c0_i32_0 = arith.constant 0 : i32
    %c0_i32_1 = arith.constant 0 : i32
    return %arg1, %c0_i32, %c0_i32_0 : i32, i32, i32
  }
  func.func @transform_3(%arg0: i32, %arg1: i32, %arg2: memref<2xi32, #tpu.memory_space<smem>>) -> (i32, i32, i32) {
    %c0_i32 = arith.constant 0 : i32
    %c0_i32_0 = arith.constant 0 : i32
    %c0_i32_1 = arith.constant 0 : i32
    return %arg1, %c0_i32, %c0_i32_0 : i32, i32, i32
  }
  func.func @transform_4(%arg0: i32, %arg1: i32, %arg2: memref<2xi32, #tpu.memory_space<smem>>) -> (i32, i32, i32) {
    %c0_i32 = arith.constant 0 : i32
    %c0_i32_0 = arith.constant 0 : i32
    %c0_i32_1 = arith.constant 0 : i32
    return %arg1, %c0_i32, %c0_i32_0 : i32, i32, i32
  }
  func.func @transform_5(%arg0: i32, %arg1: i32, %arg2: memref<2xi32, #tpu.memory_space<smem>>) -> (i32, i32, i32) {
    %c0_i32 = arith.constant 0 : i32
    %c0_i32_0 = arith.constant 0 : i32
    %c0_i32_1 = arith.constant 0 : i32
    return %arg1, %c0_i32, %c0_i32_0 : i32, i32, i32
  }
  func.func @transform_6(%arg0: i32, %arg1: i32, %arg2: memref<2xi32, #tpu.memory_space<smem>>) -> (i32, i32, i32) {
    %c0_i32 = arith.constant 0 : i32
    %c0_i32_0 = arith.constant 0 : i32
    %c0_i32_1 = arith.constant 0 : i32
    return %arg1, %c0_i32, %c0_i32_0 : i32, i32, i32
  }
  func.func @transform_7(%arg0: i32, %arg1: i32, %arg2: memref<2xi32, #tpu.memory_space<smem>>) -> (i32, i32, i32) {
    %c0_i32 = arith.constant 0 : i32
    %c0_i32_0 = arith.constant 0 : i32
    %c0_i32_1 = arith.constant 0 : i32
    return %arg1, %c0_i32, %c0_i32_0 : i32, i32, i32
  }
  func.func @transform_8(%arg0: i32, %arg1: i32, %arg2: memref<2xi32, #tpu.memory_space<smem>>) -> (i32, i32, i32) {
    %c0_i32 = arith.constant 0 : i32
    %c0_i32_0 = arith.constant 0 : i32
    %c0_i32_1 = arith.constant 0 : i32
    return %arg1, %c0_i32, %c0_i32_0 : i32, i32, i32
  }
  func.func @transform_9(%arg0: i32, %arg1: i32, %arg2: memref<2xi32, #tpu.memory_space<smem>>) -> (i32, i32, i32) {
    %c0_i32 = arith.constant 0 : i32
    %c0_i32_0 = arith.constant 0 : i32
    %c0_i32_1 = arith.constant 0 : i32
    return %arg1, %c0_i32, %c0_i32_0 : i32, i32, i32
  }
  func.func @transform_10(%arg0: i32, %arg1: i32, %arg2: memref<2xi32, #tpu.memory_space<smem>>) -> (i32, i32, i32) {
    %c0_i32 = arith.constant 0 : i32
    %c0_i32_0 = arith.constant 0 : i32
    %c0_i32_1 = arith.constant 0 : i32
    return %arg1, %c0_i32, %c0_i32_0 : i32, i32, i32
  }
  func.func @transform_11(%arg0: i32, %arg1: i32, %arg2: memref<2xi32, #tpu.memory_space<smem>>) -> (i32, i32, i32) {
    %c0_i32 = arith.constant 0 : i32
    %c0_i32_0 = arith.constant 0 : i32
    %c0_i32_1 = arith.constant 0 : i32
    return %arg1, %c0_i32, %c0_i32_0 : i32, i32, i32
  }
  func.func @transform_12(%arg0: i32, %arg1: i32, %arg2: memref<2xi32, #tpu.memory_space<smem>>) -> (i32, i32, i32) {
    %c0_i32 = arith.constant 0 : i32
    %c0_i32_0 = arith.constant 0 : i32
    %c0_i32_1 = arith.constant 0 : i32
    return %arg1, %c0_i32, %c0_i32_0 : i32, i32, i32
  }
  func.func @transform_13(%arg0: i32, %arg1: i32, %arg2: memref<2xi32, #tpu.memory_space<smem>>) -> (i32, i32, i32) {
    %c0_i32 = arith.constant 0 : i32
    %c0_i32_0 = arith.constant 0 : i32
    %c0_i32_1 = arith.constant 0 : i32
    return %arg1, %c0_i32, %c0_i32_0 : i32, i32, i32
  }
  func.func @transform_14(%arg0: i32, %arg1: i32, %arg2: memref<2xi32, #tpu.memory_space<smem>>) -> (i32, i32, i32) {
    %c0_i32 = arith.constant 0 : i32
    %c0_i32_0 = arith.constant 0 : i32
    %c0_i32_1 = arith.constant 0 : i32
    return %arg0, %c0_i32, %c0_i32_0 : i32, i32, i32
  }
}

module attributes {stable_mosaic.version = 11 : i64} {
  func.func @_conv_kernel(%arg0: i32, %arg1: memref<2xi32, #tpu.memory_space<smem>>, %arg2: memref<1x16x320xbf16, #tpu.memory_space<vmem>>, %arg3: memref<320x128xbf16, #tpu.memory_space<vmem>>, %arg4: memref<1x128xf32, #tpu.memory_space<vmem>>, %arg5: memref<1x16x128xf32, #tpu.memory_space<vmem>>) attributes {dimension_semantics = [#tpu.dimension_semantics<parallel>], iteration_bounds = array<i64: 2>, scalar_prefetch = 1 : i64, scratch_operands = 0 : i64, tpu.core_type = #tpu.core_type<tc>, window_params = [{transform_indices = @transform_0, window_bounds = array<i64: 1, 16, 320>}, {pipeline_mode = #tpu.pipeline_mode<synchronous>, transform_indices = @transform_1, window_bounds = array<i64: 320, 128>}, {pipeline_mode = #tpu.pipeline_mode<synchronous>, transform_indices = @transform_2, window_bounds = array<i64: 1, 128>}, {transform_indices = @transform_3, window_bounds = array<i64: 1, 16, 128>}]} {
    %0 = arith.index_cast %arg0 : i32 to index
    %1 = memref.load %arg1[%0] : memref<2xi32, #tpu.memory_space<smem>>
    %c0 = arith.constant 0 : index
    %c0_0 = arith.constant 0 : index
    %c0_1 = arith.constant 0 : index
    %2 = vector.load %arg2[%c0, %c0_0, %c0_1] : memref<1x16x320xbf16, #tpu.memory_space<vmem>>, vector<1x16x320xbf16>
    %3 = vector.shape_cast %2 : vector<1x16x320xbf16> to vector<16x320xbf16>
    %c0_2 = arith.constant 0 : index
    %c0_3 = arith.constant 0 : index
    %4 = vector.load %arg3[%c0_2, %c0_3] : memref<320x128xbf16, #tpu.memory_space<vmem>>, vector<320x128xbf16>
    %cst = arith.constant dense<0.000000e+00> : vector<16x128xf32>
    %5 = tpu.matmul %3, %4, %cst {dimension_numbers = #tpu.dot_dimension_numbers<[1], [0], [0], [1], [0, 0, 1, 1], [], []>} : vector<16x320xbf16>, vector<320x128xbf16>, vector<16x128xf32> -> vector<16x128xf32>
    %c0_4 = arith.constant 0 : index
    %c0_5 = arith.constant 0 : index
    %6 = vector.load %arg4[%c0_4, %c0_5] : memref<1x128xf32, #tpu.memory_space<vmem>>, vector<1x128xf32>
    %7 = vector.broadcast %6 : vector<1x128xf32> to vector<16x128xf32>
    %8 = arith.addf %5, %7 : vector<16x128xf32>
    %9 = tpu.iota {dimensions = array<i32: 0>} : vector<16x1xi32>
    %10 = vector.broadcast %1 : i32 to vector<16x1xi32>
    %11 = arith.cmpi slt, %9, %10 : vector<16x1xi32>
    %cst_6 = arith.constant 0.000000e+00 : f32
    %12 = vector.shape_cast %11 : vector<16x1xi1> to vector<16x1xi1>
    %13 = vector.broadcast %12 : vector<16x1xi1> to vector<16x128xi1>
    %14 = vector.broadcast %cst_6 : f32 to vector<16x128xf32>
    %15 = arith.select %13, %8, %14 : vector<16x128xi1>, vector<16x128xf32>
    %c0_7 = arith.constant 0 : index
    %c0_8 = arith.constant 0 : index
    %c0_9 = arith.constant 0 : index
    %16 = vector.load %arg5[%c0_7, %c0_8, %c0_9] : memref<1x16x128xf32, #tpu.memory_space<vmem>>, vector<1x16x128xf32>
    %17 = vector.shape_cast %16 : vector<1x16x128xf32> to vector<16x128xf32>
    %18 = vector.shape_cast %15 : vector<16x128xf32> to vector<1x16x128xf32>
    tpu.vector_store %arg5[%c0_7, %c0_8, %c0_9], %18 {strides = array<i32>} : memref<1x16x128xf32, #tpu.memory_space<vmem>>, vector<1x16x128xf32>,
    return
  }
  func.func @transform_0(%arg0: i32, %arg1: memref<2xi32, #tpu.memory_space<smem>>) -> (i32, i32, i32) {
    %c0_i32 = arith.constant 0 : i32
    %c0_i32_0 = arith.constant 0 : i32
    %c0_i32_1 = arith.constant 0 : i32
    return %arg0, %c0_i32, %c0_i32_0 : i32, i32, i32
  }
  func.func @transform_1(%arg0: i32, %arg1: memref<2xi32, #tpu.memory_space<smem>>) -> (i32, i32) {
    %c0_i32 = arith.constant 0 : i32
    %c0_i32_0 = arith.constant 0 : i32
    %c0_i32_1 = arith.constant 0 : i32
    return %c0_i32, %c0_i32_0 : i32, i32
  }
  func.func @transform_2(%arg0: i32, %arg1: memref<2xi32, #tpu.memory_space<smem>>) -> (i32, i32) {
    %c0_i32 = arith.constant 0 : i32
    %c0_i32_0 = arith.constant 0 : i32
    %c0_i32_1 = arith.constant 0 : i32
    return %c0_i32, %c0_i32_0 : i32, i32
  }
  func.func @transform_3(%arg0: i32, %arg1: memref<2xi32, #tpu.memory_space<smem>>) -> (i32, i32, i32) {
    %c0_i32 = arith.constant 0 : i32
    %c0_i32_0 = arith.constant 0 : i32
    %c0_i32_1 = arith.constant 0 : i32
    return %arg0, %c0_i32, %c0_i32_0 : i32, i32, i32
  }
}

</mosaic_0001>

<bundles_post_ra>
// kernel: transformer_forward.3
= control target key start
LH: loop header
LB: loop body
LE: loop exit
PB: predicated region body
PF: predicated region fallthrough
CT: control target
= control target key end

     0   :  { %s494_s0 = inlined_call_operand.vmem [shape: s32[2], index: 0, kind: input, shape index: {}]   ;;  %s495_s1 = inlined_call_operand.vmem [shape: bf16[2,16,80], index: 1, kind: input, shape index: {}]   ;;  %s496_s2 = inlined_call_operand.vmem [shape: bf16[80,128], index: 2, kind: input, shape index: {}]   ;;  %s497_s3 = inlined_call_operand.vmem [shape: f32[1,128], index: 3, kind: input, shape index: {}]   ;;  %s498_s4 = inlined_call_operand.vmem [shape: f32[2,16,128], index: 4, kind: output, shape index: {}]  }
   0x1   :  { %s9_s17 = sshll.u32 %s494_s0, 4  ;;  %s10_s17 = int_to_ptr.vmem [resolvable:$true] %s9_s17 }
   0x2   :  { %s406_s18 = scalar_lea.vmem %s10_s17, 16  ;;  %p411_p1 = scmp.lt.s32.totalorder %s10_s17, %s10_s17 }
   0x3   :  { %p407_p0 = scmp.ne.s32.totalorder %s10_s17, %s406_s18  ;;  %p412_p2 = scmp.lt.s32.totalorder %s406_s18, %s406_s18 }
   0x5   :  { %p413_p3 = por %p412_p2, %p411_p1 }
   0x7   :  { %p414_p4 = pnand %p413_p3, %p407_p0 }
   0x9   :  { %417 = shalt.err (!%p414_p4)  }
   0xa   :  { %s428_s19 = smov [#allocation3]  }
   0xb   :  { %12 = dma.vmem_to_smem %s10_s17, 16, %s428_s19, [#allocation2] }
   0xc   :  { %422 = dma.done.wait [#allocation2], 16 }
   0xd   :  { %423 = vsyncadd [#allocation2], 4294967280 }
   0xe   :  { %14 = sfence }
   0xf   :  { %s459_s20 = smov 0  }
  0x10 LB: > { %s348_s0 = sadd.s32 4294967295, %s426_s20   ;;  %p352_p5 = scmp.ge.s32.totalorder %s426_s20, 1  ;;  %s426_s20 = sphi %s459_s20, %s20_s20  }
  0x11   : > { %p144_p6 = scmp.lt.s32.totalorder %s426_s20, 3 }
  0x13   : > { %p145_p7 = pnand %p352_p5, %p144_p6 }
  0x14   : > { %v400_v0 = vld [vmem:[%s496_s2] sm:$0xff] (!%p145_p7)   ;;  %v429_v1 = vmov (!%p145_p7), 0.0   ;;  %v401_v2 = vld [vmem:[%s496_s2 + $0x8] sm:$0xff] (!%p145_p7)   ;;  %vm430_vm0 = vmmov (!%p145_p7), 0   ;;  %p168_p8 = scmp.lt.s32.totalorder (!%p145_p7), %s348_s0, 1  ;;  %v402_v3 = vld [vmem:[%s496_s2 + $0x10] sm:$0xff] (!%p145_p7)   ;;  %v279_v7 = vlaneseq (!%p145_p7) }
  0x15   : > { %148 = sbr.rel (%p145_p7) target bundleno = 259 (0x103), region = 32  ;;  %375 = vmatprep.subr.bf16.mxu0 (!%p145_p7), %v429_v1  ;;  %385 = vmatprep.mubr.msk.bf16.mxu0 (!%p145_p7), %vm430_vm0, %v429_v1  ;;  %v403_v4 = vld [vmem:[%s496_s2 + $0x18] sm:$0xff] (!%p145_p7)   ;;  %v404_v5 = vld [vmem:[%s496_s2 + $0x20] sm:$0xff] (!%p145_p7)   ;;  %vm234_vm1 = vcmask (!%p145_p7), 654336   ;;  %s179_s10 = sld [smem:[#allocation3 + %s348_s0]] (!%p145_p7) }
  0x16   : > { %376 = vmatpush3.bf16.msra.mxu0 (!%p145_p7), %v400_v0  ;;  %v280_v8 = vshrl.u32 (!%p145_p7), %v279_v7, 7  ;;  %v357_v10 = vld [vmem:[%s497_s3] ss:$0 sm:$0xff] (!%p145_p7) }
  0x17   : > { %377 = vmatprep.subr.bf16.mxu0 (!%p145_p7), %v429_v1 }
  0x18   : > { %v281_v11 = vadd.s32 (!%p145_p7), 8, %v280_v8 }
  0x1a   : > { %378 = vmatpush3.bf16.msra.mxu0 (!%p145_p7), %v401_v2 }
  0x1b   : > { %379 = vmatprep.subr.bf16.mxu0 (!%p145_p7), %v429_v1  ;;  %v282_v9 = vstv (!%p145_p7), %s179_s10 }
  0x1c   : > { %s169_s25 = scalar_select %p168_p8, %s348_s0, 1  ;;  %vm283_vm2 = vcmp.lt.s32.totalorder %v280_v8, %v282_v9  ;;  %vm284_vm3 = vcmp.lt.s32.totalorder %v281_v11, %v282_v9 }
  0x1e   : > { %s367_s28 = sshll.u32 %s169_s25, 3  ;;  %380 = vmatpush3.bf16.msra.mxu0 %v402_v3  ;;  %s368_s11 = sshll.u32 %s169_s25, 4 }
  0x1f   : > { %s172_s5 = scalar_lea.vmem %s495_s1, %s367_s28  ;;  %381 = vmatprep.subr.bf16.mxu0 %v429_v1  ;;  %s177_s16 = scalar_lea.vmem %s498_s4, %s368_s11 }
  0x20   : > { %v405_v6 = vld [vmem:[%s172_s5] sm:$0xff]  }
  0x22   : > { %382 = vmatpush3.bf16.msra.mxu0 %v403_v4 }
  0x23   : > { %383 = vmatprep.subr.bf16.mxu0 %v429_v1 }
  0x26   : > { %384 = vmatpush3.bf16.msra.mxu0 %v404_v5 }
  0x29   : > { %386 = vmatmul.mubr.msk.bf16.vlgmr.msra.gmra.mrb[0].mxu0 %vm234_vm1, %v405_v6 }
  0xfc   : > { %v272_v12 = vpop.f32.mrb[0].mxu0 }
  0xfd   : > { %v273_v13 = vadd.f32 %v357_v10, %v272_v12  ;;  %v387_v14 = vpop.f32.mrb[1].mxu0 }
  0xfe   : > { %v275_v15 = vpop.f32.mrb[2].mxu0 }
  0xff   : > { %v289_v16 = vsel %vm283_vm2, %v273_v13, 0.0  ;;  %v276_v17 = vadd.f32 %v357_v10, %v275_v15  ;;  %v388_v18 = vpop.f32.mrb[3].mxu0 }
 0x100   : > { %291 = vst [vmem:[%s177_s16] sm:$0xff] %v289_v16 }
 0x101   : > { %v290_v19 = vsel %vm284_vm3, %v276_v17, 0.0 }
 0x102   : > { %292 = vst [vmem:[%s177_s16 + $0x8] sm:$0xff] %v290_v19 }
 0x103 PF: > { %s20_s20 = sadd.s32 1, %s426_s20  }
 0x104   : > { %p17_p9 = scmp.ge.s32.totalorder %s20_s20, 4  }
 0x106   :  { %19 = sbr.rel (!%p17_p9) target bundleno = 16 (0x10), region = 62 }

// kernel: transformer_forward.5
= control target key start
LH: loop header
LB: loop body
LE: loop exit
PB: predicated region body
PF: predicated region fallthrough
CT: control target
= control target key end

     0   :  { %s774_s0 = inlined_call_operand.vmem [shape: s32[2], index: 0, kind: input, shape index: {}]   ;;  %s775_s1 = inlined_call_operand.vmem [shape: bf16[2,16,320], index: 1, kind: input, shape index: {}]   ;;  %s776_s2 = inlined_call_operand.vmem [shape: bf16[320,128], index: 2, kind: input, shape index: {}]   ;;  %s777_s3 = inlined_call_operand.vmem [shape: f32[1,128], index: 3, kind: input, shape index: {}]   ;;  %s778_s4 = inlined_call_operand.vmem [shape: f32[2,16,128], index: 4, kind: output, shape index: {}]  }
   0x1   :  { %s9_s17 = sshll.u32 %s774_s0, 4  ;;  %s10_s17 = int_to_ptr.vmem [resolvable:$true] %s9_s17 }
   0x2   :  { %s632_s18 = scalar_lea.vmem %s10_s17, 16  ;;  %p637_p1 = scmp.lt.s32.totalorder %s10_s17, %s10_s17 }
   0x3   :  { %p633_p0 = scmp.ne.s32.totalorder %s10_s17, %s632_s18  ;;  %p638_p2 = scmp.lt.s32.totalorder %s632_s18, %s632_s18 }
   0x5   :  { %p639_p3 = por %p638_p2, %p637_p1 }
   0x7   :  { %p640_p4 = pnand %p639_p3, %p633_p0 }
   0x9   :  { %643 = shalt.err (!%p640_p4)  }
   0xa   :  { %s654_s19 = smov [#allocation3]  }
   0xb   :  { %12 = dma.vmem_to_smem %s10_s17, 16, %s654_s19, [#allocation2] }
   0xc   :  { %648 = dma.done.wait [#allocation2], 16 }
   0xd   :  { %649 = vsyncadd [#allocation2], 4294967280 }
   0xe   :  { %14 = sfence }
   0xf   :  { %s685_s20 = smov 0  }
  0x10 LB: > { %s691_s0 = sadd.s32 4294967295, %s652_s20   ;;  %p525_p5 = scmp.ge.s32.totalorder %s652_s20, 1  ;;  %s652_s20 = sphi %s685_s20, %s20_s20  }
  0x11   : > { %p144_p6 = scmp.lt.s32.totalorder %s652_s20, 3 }
  0x13   : > { %p145_p7 = pnand %p525_p5, %p144_p6 }
  0x14   : > { %v608_v0 = vld [vmem:[%s776_s2 + $0x40] sm:$0xff] (!%p145_p7)   ;;  %v655_v2 = vmov (!%p145_p7), 0.0   ;;  %v610_v3 = vld [vmem:[%s776_s2 + $0x48] sm:$0xff] (!%p145_p7)   ;;  %vm656_vm0 = vmmov (!%p145_p7), 0   ;;  %v612_v5 = vld [vmem:[%s776_s2 + $0x50] sm:$0xff] (!%p145_p7)   ;;  %p168_p8 = scmp.lt.s32.totalorder (!%p145_p7), %s691_s0, 1  ;;  %v452_v26 = vlaneseq (!%p145_p7) }
  0x15   : > { %148 = sbr.rel (%p145_p7) target bundleno = 276 (0x114), region = 32  ;;  %v609_v1 = vld [vmem:[%s776_s2] sm:$0xff] (!%p145_p7)   ;;  %584 = vmatprep.subr.bf16.mxu1 (!%p145_p7), %v655_v2  ;;  %557 = vmatprep.subr.bf16.mxu0 (!%p145_p7), %v608_v0  ;;  %v611_v4 = vld [vmem:[%s776_s2 + $0x8] sm:$0xff] (!%p145_p7)   ;;  %v613_v6 = vld [vmem:[%s776_s2 + $0x10] sm:$0xff] (!%p145_p7)   ;;  %vm366_vm1 = vcmask (!%p145_p7), 523264   ;;  %s179_s16 = sld [smem:[#allocation3 + %s691_s0]] (!%p145_p7) }
  0x16   : > { %558 = vmatpush3.bf16.msra.mxu0 (!%p145_p7), %v609_v1  ;;  %592 = vmatprep.mubr.msk.bf16.mxu1 (!%p145_p7), %vm656_vm0, %v655_v2  ;;  %v614_v7 = vld [vmem:[%s776_s2 + $0x58] sm:$0xff] (!%p145_p7)   ;;  %v618_v8 = vld [vmem:[%s776_s2 + $0x80] sm:$0xff] (!%p145_p7)   ;;  %v621_v11 = vld [vmem:[%s776_s2 + $0x88] sm:$0xff] (!%p145_p7)   ;;  %v453_v29 = vshrl.u32 (!%p145_p7), %v452_v26, 7 }
  0x17   : > { %559 = vmatprep.subr.bf16.mxu0 (!%p145_p7), %v610_v3  ;;  %v615_v9 = vld [vmem:[%s776_s2 + $0x18] sm:$0xff] (!%p145_p7)   ;;  %v616_v10 = vld [vmem:[%s776_s2 + $0x60] sm:$0xff] (!%p145_p7)   ;;  %585 = vmatpush3.bf16.msra.mxu1 (!%p145_p7), %v618_v8  ;;  %v619_v13 = vld [vmem:[%s776_s2 + $0x68] sm:$0xff] (!%p145_p7)  }
  0x18   : > { %586 = vmatprep.subr.bf16.mxu1 (!%p145_p7), %v655_v2  ;;  %v617_v12 = vld [vmem:[%s776_s2 + $0x20] sm:$0xff] (!%p145_p7)   ;;  %v624_v14 = vld [vmem:[%s776_s2 + $0x90] sm:$0xff] (!%p145_p7)   ;;  %v620_v15 = vld [vmem:[%s776_s2 + $0x28] sm:$0xff] (!%p145_p7)   ;;  %v454_v37 = vadd.s32 (!%p145_p7), 8, %v453_v29 }
  0x19   : > { %v622_v16 = vld [vmem:[%s776_s2 + $0x70] sm:$0xff] (!%p145_p7)   ;;  %v630_v18 = vld [vmem:[%s776_s2 + $0x98] sm:$0xff] (!%p145_p7)   ;;  %v529_v32 = vld [vmem:[%s777_s3] ss:$0 sm:$0xff] (!%p145_p7) }
  0x1a   : > { %560 = vmatpush3.bf16.msra.mxu0 (!%p145_p7), %v611_v4  ;;  %v623_v19 = vld [vmem:[%s776_s2 + $0x30] sm:$0xff] (!%p145_p7)   ;;  %v625_v21 = vld [vmem:[%s776_s2 + $0x78] sm:$0xff] (!%p145_p7)  }
  0x1b   : > { %561 = vmatprep.subr.bf16.mxu0 (!%p145_p7), %v612_v5  ;;  %587 = vmatpush3.bf16.msra.mxu1 (!%p145_p7), %v621_v11  ;;  %v626_v22 = vld [vmem:[%s776_s2 + $0x38] sm:$0xff] (!%p145_p7)   ;;  %v455_v35 = vstv (!%p145_p7), %s179_s16 }
  0x1c   : > { %s718_s9 = scalar_select %p168_p8, %s691_s0, 1  ;;  %588 = vmatprep.subr.bf16.mxu1 %v655_v2  ;;  %vm456_vm2 = vcmp.lt.s32.totalorder %v453_v29, %v455_v35  ;;  %vm457_vm3 = vcmp.lt.s32.totalorder %v454_v37, %v455_v35 }
  0x1e   : > { %562 = vmatpush3.bf16.msra.mxu0 %v613_v6  ;;  %s596_s18 = smul.u32 24, %s718_s9  ;;  %s556_s19 = sshll.u32 %s718_s9, 4 }
  0x1f   : > { %563 = vmatprep.subr.bf16.mxu0 %v614_v7  ;;  %589 = vmatpush3.bf16.msra.mxu1 %v624_v14  ;;  %s177_s22 = scalar_lea.vmem %s778_s4, %s556_s19 }
  0x20   : > { %s172_s28 = scalar_lea.vmem %s775_s1, %s596_s18  ;;  %590 = vmatprep.subr.bf16.mxu1 %v655_v2 }
  0x21   : > { %v629_v17 = vld [vmem:[%s172_s28 + $0x4] ss:$12 sps:$4 sm:$0xff]   ;;  %v631_v20 = vld [vmem:[%s172_s28 + $0x8] ss:$12 sps:$4 sm:$0xff]   ;;  %v627_v23 = vld [vmem:[%s172_s28] ss:$12 sps:$4 sm:$0xff]  }
  0x22   : > { %564 = vmatpush3.bf16.msra.mxu0 %v615_v9  ;;  %402 = vmatprep.mubr.bf16.mxu0 %v629_v17 }
  0x23   : > { %565 = vmatprep.subr.bf16.mxu0 %v616_v10  ;;  %591 = vmatpush3.bf16.msra.mxu1 %v630_v18 }
  0x26   : > { %566 = vmatpush3.bf16.msra.mxu0 %v617_v12  ;;  %593 = vmatmul.mubr.msk.bf16.vlgmr.msra.gmra.mrb[0].mxu1 %vm366_vm1, %v631_v20 }
  0x27   : > { %567 = vmatprep.subr.bf16.mxu0 %v619_v13 }
  0x2a   : > { %568 = vmatpush3.bf16.msra.mxu0 %v620_v15 }
  0x2b   : > { %569 = vmatprep.subr.bf16.mxu0 %v622_v16 }
  0x2e   : > { %570 = vmatpush3.bf16.msra.mxu0 %v623_v19 }
  0x2f   : > { %571 = vmatprep.subr.bf16.mxu0 %v625_v21 }
  0x32   : > { %572 = vmatpush3.bf16.msra.mxu0 %v626_v22 }
  0x35   : > { %403 = vmatmul.mubr.bf16.vlgmr.msra.gmra.mrb[0].mxu0 %v627_v23 }
  0xf9   : > { %v445_v24 = vpop.f32.mrb[0].mxu1 }
  0xfa   : > { %v594_v25 = vpop.f32.mrb[1].mxu1 }
  0xfb   : > { %v448_v27 = vpop.f32.mrb[2].mxu1 }
  0xfc   : > { %v595_v28 = vpop.f32.mrb[3].mxu1 }
 0x108   : > { %v573_v30 = vpop.f32.mrb[0].mxu0 }
 0x109   : > { %v574_v31 = vpop.f32.mrb[1].mxu0 }
 0x10a   : > { %v575_v33 = vadd.f32 %v574_v31, %v573_v30  ;;  %v576_v34 = vpop.f32.mrb[2].mxu0 }
 0x10b   : > { %v577_v36 = vpop.f32.mrb[3].mxu0 }
 0x10c   : > { %v405_v38 = vadd.f32 %v575_v33, %v529_v32  ;;  %v578_v39 = vadd.f32 %v577_v36, %v576_v34 }
 0x10e   : > { %v446_v40 = vadd.f32 %v445_v24, %v405_v38  ;;  %v408_v41 = vadd.f32 %v578_v39, %v529_v32 }
 0x110   : > { %v462_v42 = vsel %vm456_vm2, %v446_v40, 0.0  ;;  %v449_v43 = vadd.f32 %v448_v27, %v408_v41 }
 0x111   : > { %464 = vst [vmem:[%s177_s22] sm:$0xff] %v462_v42 }
 0x112   : > { %v463_v44 = vsel %vm457_vm3, %v449_v43, 0.0 }
 0x113   : > { %465 = vst [vmem:[%s177_s22 + $0x8] sm:$0xff] %v463_v44 }
 0x114 PF: > { %s20_s20 = sadd.s32 1, %s652_s20  }
 0x115   : > { %p17_p9 = scmp.ge.s32.totalorder %s20_s20, 4  }
 0x117   :  { %19 = sbr.rel (!%p17_p9) target bundleno = 16 (0x10), region = 62 }

// kernel: transformer_forward.4
= control target key start
LH: loop header
LB: loop body
LE: loop exit
PB: predicated region body
PF: predicated region fallthrough
CT: control target
= control target key end

     0   :  { %s5579_s0 = inlined_call_operand.vmem [shape: s32[2], index: 0, kind: input, shape index: {}]   ;;  %s5580_s1 = inlined_call_operand.vmem [shape: f32[2,16,64], index: 1, kind: input, shape index: {}]   ;;  %s5581_s2 = inlined_call_operand.vmem [shape: f32[16,64], index: 2, kind: input, shape index: {}]   ;;  %s5582_s3 = inlined_call_operand.vmem [shape: bf16[2,64,192], index: 3, kind: input, shape index: {}]   ;;  %s5583_s4 = inlined_call_operand.vmem [shape: f32[2,1,192], index: 4, kind: input, shape index: {}]   ;;  %s5584_s5 = inlined_call_operand.vmem [shape: bf16[2,64,64], index: 5, kind: input, shape index: {}]   ;;  %s5585_s6 = inlined_call_operand.vmem [shape: f32[2,1,64], index: 6, kind: input, shape index: {}]   ;;  %s5586_s7 = inlined_call_operand.vmem [shape: f32[2,1,64], index: 7, kind: input, shape index: {}]   ;;  %s5587_s8 = inlined_call_operand.vmem [shape: f32[2,1,64], index: 8, kind: input, shape index: {}]   ;;  %s5588_s9 = inlined_call_operand.vmem [shape: bf16[2,64,2048], index: 9, kind: input, shape index: {}]   ;;  %s5589_s10 = inlined_call_operand.vmem [shape: f32[2,1,2048], index: 10, kind: input, shape index: {}]   ;;  %s5590_s11 = inlined_call_operand.vmem [shape: bf16[2,2048,64], index: 11, kind: input, shape index: {}]   ;;  %s5591_s12 = inlined_call_operand.vmem [shape: f32[2,1,64], index: 12, kind: input, shape index: {}]   ;;  %s5592_s13 = inlined_call_operand.vmem [shape: f32[2,1,64], index: 13, kind: input, shape index: {}]   ;;  %s5593_s14 = inlined_call_operand.vmem [shape: f32[2,1,64], index: 14, kind: input, shape index: {}]   ;;  %s5594_s15 = inlined_call_operand.vmem [shape: f32[2,16,64], index: 15, kind: output, shape index: {}]  }
   0x1   :  { %5601 = sst [smem:[#allocation15_spill]] %s5580_s1  ;;  %s20_s20 = sshll.u32 %s5579_s0, 4  ;;  %s21_s20 = int_to_ptr.vmem [resolvable:$true] %s20_s20 }
   0x2   :  { %5602 = sst [smem:[#allocation16_spill]] %s5581_s2  ;;  %s4825_s21 = scalar_lea.vmem %s21_s20, 16 }
   0x3   :  { %5603 = sst [smem:[#allocation17_spill]] %s5582_s3  ;;  %p4826_p0 = scmp.ne.s32.totalorder %s21_s20, %s4825_s21 }
   0x4   :  { %5604 = sst [smem:[#allocation18_spill]] %s5583_s4  ;;  %p4830_p1 = scmp.lt.s32.totalorder %s21_s20, %s21_s20 }
   0x5   :  { %5605 = sst [smem:[#allocation19_spill]] %s5584_s5  ;;  %p4831_p2 = scmp.lt.s32.totalorder %s4825_s21, %s4825_s21 }
   0x6   :  { %5606 = sst [smem:[#allocation20_spill]] %s5588_s9 }
   0x7   :  { %p4832_p3 = por %p4831_p2, %p4830_p1 }
   0x9   :  { %p4833_p4 = pnand %p4832_p3, %p4826_p0 }
   0xb   :  { %4836 = shalt.err (!%p4833_p4)  }
   0xc   :  { %s4879_s22 = smov [#allocation4]  }
   0xd   :  { %23 = dma.vmem_to_smem %s21_s20, 16, %s4879_s22, [#allocation3] }
   0xe   :  { %4857 = dma.done.wait [#allocation3], 16 }
   0xf   :  { %4858 = vsyncadd [#allocation3], 4294967280 }
  0x10   :  { %25 = sfence }
  0x11   :  { %s4973_s23 = smov 0   ;;  %s4975_s24 = smov 0  }
  0x12   :  { %s4977_s25 = smov 0   ;;  %s4979_s0 = smov 0  }
  0x13   :  { %s4981_s26 = smov 0  }
  0x14 LB: > { %5607 = sst [smem:[#allocation6_spill]] %s4861_s23  ;;  %s40_s27 = sadd.s32 1, %s4869_s25  ;;  %s4877_s26 = sphi %s4981_s26, %s31_s26   ;;  %s4873_s0 = sphi %s4979_s0, %s5634_s0   ;;  %s4869_s25 = sphi %s4977_s25, %s5633_s25   ;;  %s4865_s24 = sphi %s4975_s24, %s5632_s24   ;;  %s4861_s23 = sphi %s4973_s23, %s5631_s23  }
  0x15   : > { %5608 = sst [smem:[#allocation7_spill]] %s4869_s25  ;;  %s43_s28 = sadd.s32 1, %s4873_s0 }
  0x16   : > { %5609 = sst [smem:[#allocation8_spill]] %s4873_s0  ;;  %p41_p5 = scmp.ge.s32.totalorder %s40_s27, 2 }
  0x17   : > { %5610 = sst [smem:[#allocation9_spill]] %s4877_s26  ;;  %p4060_p6 = scmp.ge.s32.totalorder %s4877_s26, 1 }
  0x18   : > { %p537_p7 = scmp.lt.s32.totalorder %s4877_s26, 5  ;;  %s5636_s27 = smov (%p41_p5, %s40_s27), 0 }
  0x19   : > { %5611 = sst [smem:[#allocation10_spill]] %s5636_s27  ;;  %s5638_s28 = smov (!%p41_p5, %s43_s28), %s4873_s0 }
  0x1a   : > { %p538_p8 = pnand %p4060_p6, %p537_p7  ;;  %p45_p9 = scmp.ge.s32.totalorder %s5638_s28, 2 }
  0x1c   : > { %s5640_s28 = smov (%p45_p9, %s5638_s28), 0  ;;  %541 = sbr.rel (%p538_p8) target bundleno = 3886 (0xf2e), region = 76 }
  0x1d   : > { %5612 = sst [smem:[#allocation11_spill]] %s5640_s28 }
  0x23   : > { %p629_p10 = scmp.lt.s32.totalorder %s4865_s24, 1  ;;  %p634_p11 = scmp.lt.s32.totalorder %s4861_s23, 1 }
  0x24   : > { %s5006_s29 = sld [smem:[#allocation4 + %s4865_s24]] }
  0x25   : > { %s5642_s24 = smov (!%p629_p10, %s4865_s24), 1  ;;  %s5614_s1 = sld [smem:[#allocation15_spill]] }
  0x26   : > { %s5009_s30 = scalar_select %p634_p11, %s4861_s23, 1 }
  0x27   : > { %s4310_s16 = sshll.u32 %s5642_s24, 4  ;;  %s5615_s3 = sld [smem:[#allocation17_spill]] }
  0x28   : > { %s4311_s20 = sshll.u32 %s5009_s30, 6  ;;  %s4065_s27 = sshll.u32 %s5009_s30, 1 }
  0x29   : > { %s5617_s4 = sld [smem:[#allocation18_spill]]  ;;  %s4312_s24 = sshll.u32 %s5009_s30, 5 }
  0x2a   : > { %5613 = sst [smem:[#allocation12_spill]] %s5006_s29  ;;  %s5619_s5 = sld [smem:[#allocation19_spill]] }
  0x2b   : > { %s633_s19 = scalar_lea.vmem %s5614_s1, %s4310_s16  ;;  %s4313_s0 = sshll.u32 %s5009_s30, 9 }
  0x2c   : > { %s5620_s9 = sld [smem:[#allocation20_spill]]  ;;  %s4314_s18 = sshll.u32 %s5009_s30, 10 }
  0x2d   : > { %s5018_s28 = scalar_lea.vmem %s5615_s3, %s4311_s20  ;;  %s673_s20 = scalar_lea.vmem %s5591_s12, %s5009_s30 }
  0x2e   : > { %5616 = sst [smem:[#allocation13_spill]] %s5018_s28  ;;  %s5064_s28 = scalar_lea.vmem %s5590_s11, %s4314_s18 }
  0x2f   : > { %s5024_s26 = scalar_lea.vmem %s5617_s4, %s4065_s27  ;;  %s4070_s27 = sshll.u32 %s5009_s30, 4 }
  0x30   : > { %5618 = sst [smem:[#allocation14_spill]] %s5024_s26  ;;  %s5030_s17 = scalar_lea.vmem %s5619_s5, %s4312_s24 }
  0x31   : > { %s5054_s1 = scalar_lea.vmem %s5589_s10, %s4070_s27  ;;  %s676_s4 = scalar_lea.vmem %s5592_s13, %s5009_s30 }
  0x32   : > { %s5049_s2 = scalar_lea.vmem %s5620_s9, %s4313_s0  ;;  %s679_s29 = scalar_lea.vmem %s5593_s14, %s5009_s30 }
  0x33   : > { %s5077_s9 = scalar_lea.vmem %s5594_s15, %s4310_s16  ;;  %s5621_s21 = sld [smem:[#allocation6_spill]] }
  0x39   : > { %p4075_p12 = scmp.ne.s32.totalorder %s5621_s21, 0 }
  0x3a   : > { %v691_v0 = vld [vmem:[%s633_s19] sm:$0xff] (!%p4075_p12)  ;;  %s5622_s22 = sld [smem:[#allocation16_spill]] (!%p4075_p12)  ;;  %vm697_vm0 = vcmask (!%p4075_p12), 523264   ;;  %v692_v2 = vld [vmem:[%s633_s19 + $0x8] sm:$0xff] (!%p4075_p12) }
  0x3b   : > { %690 = sbr.rel (%p4075_p12) target bundleno = 68 (0x44), region = 80 }
  0x40   : > { %v693_v1 = vld [vmem:[%s5622_s22] sm:$0xff] (!%p4075_p12)  ;;  %v694_v4 = vld [vmem:[%s5622_s22 + $0x8] sm:$0xff] (!%p4075_p12) }
  0x41   : > { %v695_v3 = vadd.f32 (!%p4075_p12), %v693_v1, %v691_v0  ;;  %v696_v5 = vadd.f32 (!%p4075_p12), %v694_v4, %v692_v2 }
  0x43   : > { %698 = vst.msk [vmem:[#allocation2] sm:$0xff] %vm697_vm0, %v695_v3  ;;  %699 = vst.msk [vmem:[#allocation2 + $0x8] sm:$0xff] %vm697_vm0, %v696_v5 }
  0x44 PF: > { %s5623_s16 = sld [smem:[#allocation13_spill]]  ;;  %v4880_v8 = vmov 0   ;;  %vm763_vm1 = vcmask 523264   ;;  %s5624_s19 = sld [smem:[#allocation14_spill]]  ;;  %v713_v18 = vlaneseq  ;;  %v4881_v20 = vmov 0.0  }
  0x45   : > { %799 = vmatprep.mubr.bf16.mxu0 %v4880_v8  ;;  %4516 = vmatprep.subr.bf16.mxu1 %v4881_v20  ;;  %vm4882_vm2 = vmmov 0   ;;  %s4883_s23 = smov 112   ;;  %s4884_s26 = smov 64   ;;  %vm828_vm3 = vcmask 130048  }
  0x46   : > { %v5096_v19 = vshrl.u32 %v713_v18, 7  ;;  %4518 = vmatprep.mubr.msk.bf16.mxu1 %vm4882_vm2, %v4881_v20  ;;  %s4885_s0 = smov 48   ;;  %s5625_s27 = sld [smem:[#allocation12_spill]]  ;;  %v813_v41 = vand.u32 127, %v713_v18 }
  0x47   : > { %s4886_s24 = smov 32   ;;  %s4887_s21 = smov 96  }
  0x48   : > { %v5101_v21 = vsub.s32 0, %v5096_v19  ;;  %v5105_v23 = vsub.s32 1, %v5096_v19  ;;  %s4888_s3 = smov 80   ;;  %s4889_s18 = smov 16  }
  0x49   : > { %s5626_s25 = scalar_lea.vmem %s5585_s6, %s5009_s30 }
  0x4a   : > { %v4639_v6 = vld [vmem:[%s5623_s16 + $0x4] ss:$8 sps:$4 sm:$0xff]   ;;  %v4641_v7 = vld [vmem:[%s5623_s16] ss:$8 sps:$4 sm:$0xff]   ;;  %v4642_v9 = vld [vmem:[%s5623_s16 + $0x14] ss:$8 sps:$4 sm:$0xff]  }
  0x4b   : > { %767 = vmatprep.subr.bf16.mxu0 %v4639_v6  ;;  %v4644_v10 = vld [vmem:[%s5623_s16 + $0x10] ss:$8 sps:$4 sm:$0xff]   ;;  %v4645_v11 = vld [vmem:[%s5623_s16 + $0x24] ss:$8 sps:$4 sm:$0xff]   ;;  %v4647_v12 = vld [vmem:[%s5623_s16 + $0x20] ss:$8 sps:$4 sm:$0xff]  }
  0x4c   : > { %768 = vmatpush1.bf16.msra.mxu0 %v4641_v7  ;;  %v4648_v13 = vld [vmem:[%s5623_s16 + $0x34] ss:$8 sps:$4 sm:$0xff]   ;;  %v4650_v14 = vld [vmem:[%s5623_s16 + $0x30] ss:$8 sps:$4 sm:$0xff]   ;;  %v700_v15 = vld [vmem:[#allocation2] sm:$0xff]  ;;  %v814_v42 = vstv %s5625_s27  ;;  %s5628_s27 = scalar_lea.vmem %s5587_s8, %s5009_s30 }
  0x4d   : > { %769 = vmatprep.subr.bf16.mxu0 %v4642_v9  ;;  %v701_v16 = vld [vmem:[#allocation2 + $0x8] sm:$0xff]  ;;  %v711_v22 = vld [vmem:[%s5624_s19] sm:$0x3]  ;;  %vm815_vm4 = vcmp.ge.s32.totalorder %v813_v41, %v814_v42 }
  0x4e   : > { %v702_v17 = vpack.c.bf16 %v701_v16, %v700_v15  ;;  %v716_v24 = vrot.slane %v711_v22, %v5101_v21  ;;  %v720_v26 = vrot.slane %v711_v22, %v5105_v23  ;;  %v5136_v44 = vsel %vm815_vm4, -1e+09, %v4881_v20  ;;  %v4651_v42 = vld [vmem:[%s5030_s17] sm:$0xff]  }
  0x50   : > { %770 = vmatpush1.bf16.msra.mxu0 %v4644_v10 }
  0x51   : > { %771 = vmatprep.subr.bf16.mxu0 %v4645_v11 }
  0x54   : > { %772 = vmatpush1.bf16.msra.mxu0 %v4647_v12 }
  0x55   : > { %773 = vmatprep.subr.bf16.mxu0 %v4648_v13 }
  0x58   : > { %774 = vmatpush1.bf16.msra.mxu0 %v4650_v14 }
  0x59   : > { %4528 = vmatprep.subr.bf16.mxu0 %v4881_v20 }
  0x5b   : > { %4084 = vmatmul.mubr.msk.bf16.vlgmr.msra.gmra.mrb[0].mxu0 %vm763_vm1, %v702_v17 }
  0x5c   : > { %4530 = vmatprep.mubr.msk.bf16.mxu0 %vm4882_vm2, %v4881_v20 }
 0x12e   : > { %v801_v25 = vpop.f32.mrb[0].mxu0 }
 0x12f   : > { %v803_v27 = vpop.f32.mrb[1].mxu0  ;;  %v802_v29 = vadd.f32 %v801_v25, %v716_v24 }
 0x130   : > { %v805_v28 = vpop.f32.mrb[2].mxu0  ;;  %v804_v32 = vadd.f32 %v803_v27, %v720_v26 }
 0x131   : > { %v806_v30 = vadd.f32 %v805_v28, %v716_v24  ;;  %v807_v31 = vpop.f32.mrb[3].mxu0 }
 0x132   : > { %v808_v33 = vadd.f32 %v807_v31, %v720_v26 }
 0x133   : > { %v5113_v34 = vpack.c.bf16 %v806_v30, %v802_v29 }
 0x134   : > { %v5115_v35 = vpack.c.bf16 %v808_v33, %v804_v32 }
 0x135   : > { %948 = vrot.lane.b32.xlu1 %v5113_v34, %s4883_s23  ;;  %826 = vrot.lane.b32.xlu0 %v5113_v34, %s4884_s26 }
 0x139   : > { %950 = vrot.lane.b32.xlu0 %v5113_v34, %s4885_s0 }
 0x1a7   : > { %v827_v36 = vpop.permute.xlu0 %826  ;;  %v949_v40 = vpop.permute.xlu1 %948 }
 0x1a8   : > { %v833_v37 = vsel %vm828_vm3, %v827_v36, 0 }
 0x1a9   : > { %4517 = vmatpush3.bf16.xpose.msra.mxu1 %v833_v37 }
 0x1aa   : > { %4522 = vmatprep.subr.bf16.mxu1 %v4881_v20 }
 0x1ab   : > { %v951_v38 = vpop.permute.xlu0 %950 }
 0x1ac   : > { %v956_v39 = vsel %vm828_vm3, %v951_v38, 0 }
 0x1ad   : > { %4529 = vmatpush3.bf16.xpose.msra.mxu0 %v956_v39 }
 0x1ae   : > { %4540 = vmatprep.subr.bf16.mxu0 %v4881_v20 }
 0x1b0   : > { %4519 = vmatmul.mubr.msk.bf16.vlgmr.msra.gmra.mrb[0].mxu1 %vm828_vm3, %v5113_v34 }
 0x1b1   : > { %4523 = vmatpush3.bf16.msra.mxu1 %v5115_v35  ;;  %4524 = vmatprep.mubr.msk.bf16.mxu1 %vm4882_vm2, %v4881_v20 }
 0x1b2   : > { %4534 = vmatprep.subr.bf16.mxu1 %v4881_v20 }
 0x1b4   : > { %4531 = vmatmul.mubr.msk.bf16.vlgmr.msra.gmra.mrb[4].mxu0 %vm828_vm3, %v949_v40 }
 0x1b5   : > { %4542 = vmatprep.mubr.msk.bf16.mxu0 %vm4882_vm2, %v4881_v20 }
 0x283   : > { %v869_v43 = vpop.f32.mrb[0].mxu1 }
 0x284   : > { %v876_v45 = vmul.f32 0.25, %v869_v43  ;;  %v4520_v46 = vpop.f32.mrb[1].mxu1  ;;  %v4652_v43 = vld [vmem:[%s5030_s17 + $0x8] sm:$0xff]  }
 0x285   : > { %v872_v47 = vpop.f32.mrb[2].mxu1  ;;  %4541 = vmatpush3.bf16.msra.mxu0 %v4652_v43 }
 0x286   : > { %v877_v48 = vmul.f32 0.25, %v872_v47  ;;  %v4521_v49 = vpop.f32.mrb[3].mxu1  ;;  %v878_v50 = vadd.f32 %v876_v45, %v5136_v44  ;;  %4552 = vmatprep.subr.bf16.mxu0 %v4881_v20 }
 0x287   : > { %v992_v51 = vpop.f32.mrb[4].mxu0 }
 0x288   : > { %v999_v52 = vmul.f32 0.25, %v992_v51  ;;  %v4532_v53 = vpop.f32.mrb[5].mxu0  ;;  %v880_v54 = vsel %vm828_vm3, %v878_v50, -inf  ;;  %v879_v55 = vadd.f32 %v877_v48, %v5136_v44 }
 0x289   : > { %881 = vmax.xlane.f32.xlu1 %v880_v54  ;;  %v995_v56 = vpop.f32.mrb[6].mxu0 }
 0x28a   : > { %v1000_v57 = vmul.f32 0.25, %v995_v56  ;;  %v4533_v58 = vpop.f32.mrb[7].mxu0  ;;  %v883_v59 = vsel %vm828_vm3, %v879_v55, -inf  ;;  %v1001_v60 = vadd.f32 %v999_v52, %v5136_v44 }
 0x28b   : > { %884 = vmax.xlane.f32.xlu0 %v883_v59 }
 0x28c   : > { %v1002_v61 = vadd.f32 %v1000_v57, %v5136_v44  ;;  %v1003_v62 = vsel %vm828_vm3, %v1001_v60, -inf }
 0x28e   : > { %v1006_v63 = vsel %vm828_vm3, %v1002_v61, -inf }
 0x28f   : > { %1004 = vmax.xlane.f32.xlu0 %v1003_v62  ;;  %1007 = vmax.xlane.f32.xlu1 %v1006_v63 }
 0x316   : > { %v882_v0 = vpop.xlane.xlu1 %881 }
 0x317   : > { %v886_v1 = vsub.f32 %v878_v50, %v882_v0 }
 0x318   : > { %v885_v2 = vpop.xlane.xlu0 %884 }
 0x319   : > { %v888_v3 = vmul.f32 1.442695, %v886_v1  ;;  %v887_v4 = vsub.f32 %v879_v55, %v885_v2 }
 0x31b   : > { %4783 = vpow2.f32 %v888_v3  ;;  %v890_v5 = vmul.f32 1.442695, %v887_v4 }
 0x31c   : > { %v1008_v6 = vpop.xlane.xlu1 %1007  ;;  %v1005_v7 = vpop.xlane.xlu0 %1004 }
 0x31d   : > { %4785 = vpow2.f32 %v890_v5  ;;  %v1010_v9 = vsub.f32 %v1002_v61, %v1008_v6  ;;  %v1009_v10 = vsub.f32 %v1001_v60, %v1005_v7 }
 0x31f   : > { %v1013_v11 = vmul.f32 1.442695, %v1010_v9  ;;  %v1011_v12 = vmul.f32 1.442695, %v1009_v10 }
 0x321   : > { %4787 = vpow2.f32 %v1013_v11 }
 0x322   : > { %4789 = vpow2.f32 %v1011_v12 }
 0x325   : > { %v4784_v13 = vpop.eup %4783 }
 0x326   : > { %v892_v14 = vsel %vm828_vm3, %v4784_v13, 0.0 }
 0x327   : > { %v4786_v15 = vpop.eup %4785  ;;  %893 = vadd.xlane.f32.xlu0 %v892_v14 }
 0x328   : > { %v895_v16 = vsel %vm828_vm3, %v4786_v15, 0.0 }
 0x329   : > { %896 = vadd.xlane.f32.xlu1 %v895_v16 }
 0x32b   : > { %v4788_v17 = vpop.eup %4787 }
 0x32c   : > { %v4790_v18 = vpop.eup %4789  ;;  %v1018_v22 = vsel %vm828_vm3, %v4788_v17, 0.0 }
 0x32d   : > { %1019 = vadd.xlane.f32.xlu1 %v1018_v22  ;;  %v1015_v24 = vsel %vm828_vm3, %v4790_v18, 0.0 }
 0x32e   : > { %1016 = vadd.xlane.f32.xlu0 %v1015_v24 }
 0x33e   : > { %1177 = vrot.lane.b32.xlu1 %v5113_v34, %s4886_s24 }
 0x342   : > { %1175 = vrot.lane.b32.xlu1 %v5113_v34, %s4887_s21 }
 0x344   : > { %1027 = vrot.lane.b32.xlu0 %v5115_v35, %s4883_s23  ;;  %s5627_s23 = scalar_lea.vmem %s5586_s7, %s5009_s30 }
 0x3b4   : > { %v894_v25 = vpop.xlane.xlu0 %893 }
 0x3b5   : > { %4791 = vrcp.f32 %v894_v25 }
 0x3b6   : > { %v897_v26 = vpop.xlane.xlu1 %896 }
 0x3b7   : > { %4793 = vrcp.f32 %v897_v26 }
 0x3ba   : > { %v1020_v27 = vpop.xlane.xlu1 %1019 }
 0x3bb   : > { %4795 = vrcp.f32 %v1020_v27  ;;  %v1017_v28 = vpop.xlane.xlu0 %1016 }
 0x3bc   : > { %4797 = vrcp.f32 %v1017_v28 }
 0x3be   : > { %v1178_v52 = vpop.permute.xlu1 %1177 }
 0x3bf   : > { %v4792_v29 = vpop.eup %4791  ;;  %v1028_v38 = vpop.permute.xlu0 %1027  ;;  %v1183_v56 = vsel %vm828_vm3, %v1178_v52, 0 }
 0x3c0   : > { %v900_v31 = vmul.f32 %v4792_v29, %v4784_v13 }
 0x3c1   : > { %v4794_v30 = vpop.eup %4793 }
 0x3c2   : > { %v901_v32 = vmul.f32 %v4794_v30, %v4786_v15  ;;  %v1176_v57 = vpop.permute.xlu1 %1175 }
 0x3c4   : > { %v902_v33 = vpack.c.bf16 %v901_v32, %v900_v31 }
 0x3c5   : > { %v4796_v36 = vpop.eup %4795 }
 0x3c6   : > { %v4798_v37 = vpop.eup %4797  ;;  %4525 = vmatmul.mubr.msk.bf16.vlgmr.msra.gmra.mrb[4].mxu1 %vm828_vm3, %v902_v33  ;;  %v1024_v39 = vmul.f32 %v4796_v36, %v4788_v17 }
 0x3c7   : > { %4535 = vmatpush3.bf16.msra.mxu1 %v1028_v38  ;;  %4536 = vmatprep.mubr.msk.bf16.mxu1 %vm4882_vm2, %v4881_v20  ;;  %v1023_v40 = vmul.f32 %v4798_v37, %v4790_v18 }
 0x3c8   : > { %4546 = vmatprep.subr.bf16.mxu1 %v4881_v20 }
 0x3c9   : > { %v1025_v41 = vpack.c.bf16 %v1024_v39, %v1023_v40 }
 0x3ce   : > { %4537 = vmatmul.mubr.msk.bf16.vlgmr.msra.gmra.mrb[8].mxu1 %vm828_vm3, %v1025_v41  ;;  %v4653_v41 = vld [vmem:[%s5030_s17 + $0x10] sm:$0xff]  }
 0x3cf   : > { %4548 = vmatprep.mubr.msk.bf16.mxu1 %vm4882_vm2, %v4881_v20  ;;  %4547 = vmatpush3.bf16.msra.mxu1 %v4651_v42 }
 0x3d0   : > { %4558 = vmatprep.subr.bf16.mxu1 %v4881_v20 }
 0x499   : > { %v940_v45 = vpop.f32.mrb[4].mxu1 }
 0x49a   : > { %v4526_v46 = vpop.f32.mrb[5].mxu1 }
 0x49b   : > { %v943_v47 = vpop.f32.mrb[6].mxu1 }
 0x49c   : > { %v947_v48 = vpack.c.bf16 %v943_v47, %v940_v45  ;;  %v4527_v49 = vpop.f32.mrb[7].mxu1 }
 0x49e   : > { %4549 = vmatmul.mubr.msk.bf16.vlgmr.msra.gmra.mrb[12].mxu1 %vm828_vm3, %v947_v48 }
 0x49f   : > { %4560 = vmatprep.mubr.msk.bf16.mxu1 %vm4882_vm2, %v4881_v20 }
 0x4a1   : > { %v1067_v50 = vpop.f32.mrb[8].mxu1 }
 0x4a2   : > { %v4538_v51 = vpop.f32.mrb[9].mxu1 }
 0x4a3   : > { %v1070_v53 = vpop.f32.mrb[10].mxu1 }
 0x4a4   : > { %v1074_v54 = vpack.c.bf16 %v1070_v53, %v1067_v50  ;;  %v4539_v55 = vpop.f32.mrb[11].mxu1 }
 0x4a6   : > { %4543 = vmatmul.mubr.msk.bf16.vlgmr.msra.gmra.mrb[8].mxu0 %vm828_vm3, %v1074_v54 }
 0x4a7   : > { %4553 = vmatpush3.bf16.xpose.msra.mxu0 %v1183_v56  ;;  %4554 = vmatprep.mubr.msk.bf16.mxu0 %vm4882_vm2, %v4881_v20 }
 0x4a8   : > { %4564 = vmatprep.subr.bf16.mxu0 %v4881_v20 }
 0x4ae   : > { %4555 = vmatmul.mubr.msk.bf16.vlgmr.msra.gmra.mrb[12].mxu0 %vm828_vm3, %v1176_v57 }
 0x4af   : > { %4566 = vmatprep.mubr.msk.bf16.mxu0 %vm4882_vm2, %v4881_v20  ;;  %4565 = vmatpush3.bf16.msra.mxu0 %v4653_v41 }
 0x4b0   : > { %4576 = vmatprep.subr.bf16.mxu0 %v4881_v20 }
 0x571   : > { %v1168_v58 = vpop.f32.mrb[12].mxu1 }
 0x572   : > { %v4550_v59 = vpop.f32.mrb[13].mxu1 }
 0x573   : > { %v1171_v60 = vpop.f32.mrb[14].mxu1 }
 0x574   : > { %v4551_v61 = vpop.f32.mrb[15].mxu1 }
 0x579   : > { %v1118_v62 = vpop.f32.mrb[8].mxu0 }
 0x57a   : > { %v5177_v63 = vadd.f32 %v1168_v58, %v1118_v62  ;;  %v4544_v0 = vpop.f32.mrb[9].mxu0 }
 0x57b   : > { %v1121_v1 = vpop.f32.mrb[10].mxu0 }
 0x57c   : > { %v5179_v2 = vadd.f32 %v1171_v60, %v1121_v1  ;;  %v4545_v3 = vpop.f32.mrb[11].mxu0 }
 0x581   : > { %v1219_v4 = vpop.f32.mrb[12].mxu0 }
 0x582   : > { %v1226_v5 = vmul.f32 0.25, %v1219_v4  ;;  %v4556_v6 = vpop.f32.mrb[13].mxu0  ;;  %v4654_v4 = vld [vmem:[%s5030_s17 + $0x18] sm:$0xff]  }
 0x583   : > { %v1222_v7 = vpop.f32.mrb[14].mxu0 }
 0x584   : > { %v1227_v9 = vmul.f32 0.25, %v1222_v7  ;;  %v4557_v10 = vpop.f32.mrb[15].mxu0  ;;  %v1228_v11 = vadd.f32 %v1226_v5, %v5136_v44 }
 0x586   : > { %v1230_v12 = vsel %vm828_vm3, %v1228_v11, -inf  ;;  %v1229_v13 = vadd.f32 %v1227_v9, %v5136_v44 }
 0x587   : > { %1231 = vmax.xlane.f32.xlu0 %v1230_v12 }
 0x588   : > { %v1233_v14 = vsel %vm828_vm3, %v1229_v13, -inf }
 0x589   : > { %1234 = vmax.xlane.f32.xlu1 %v1233_v14 }
 0x59a   : > { %1253 = vrot.lane.b32.xlu1 %v5115_v35, %s4887_s21 }
 0x59e   : > { %1353 = vrot.lane.b32.xlu1 %v5113_v34, %s4888_s3 }
 0x614   : > { %v1232_v15 = vpop.xlane.xlu0 %1231 }
 0x615   : > { %v1236_v16 = vsub.f32 %v1228_v11, %v1232_v15 }
 0x616   : > { %v1235_v17 = vpop.xlane.xlu1 %1234 }
 0x617   : > { %v1238_v18 = vmul.f32 1.442695, %v1236_v16  ;;  %v1237_v22 = vsub.f32 %v1229_v13, %v1235_v17 }
 0x619   : > { %4799 = vpow2.f32 %v1238_v18  ;;  %v1240_v24 = vmul.f32 1.442695, %v1237_v22 }
 0x61a   : > { %v1254_v25 = vpop.permute.xlu1 %1253 }
 0x61b   : > { %4801 = vpow2.f32 %v1240_v24  ;;  %4559 = vmatpush3.bf16.msra.mxu1 %v1254_v25 }
 0x61c   : > { %4570 = vmatprep.subr.bf16.mxu1 %v4881_v20 }
 0x623   : > { %v4800_v26 = vpop.eup %4799 }
 0x624   : > { %v1242_v27 = vsel %vm828_vm3, %v4800_v26, 0.0 }
 0x625   : > { %v4802_v28 = vpop.eup %4801  ;;  %1243 = vadd.xlane.f32.xlu0 %v1242_v27 }
 0x626   : > { %v1245_v29 = vsel %vm828_vm3, %v4802_v28, 0.0 }
 0x629   : > { %1246 = vadd.xlane.f32.xlu0 %v1245_v29 }
 0x63f   : > { %1355 = vrot.lane.b32.xlu0 %v5113_v34, %s4889_s18  ;;  %v1354_v34 = vpop.permute.xlu1 %1353 }
 0x6b2   : > { %v1244_v30 = vpop.xlane.xlu0 %1243 }
 0x6b3   : > { %4803 = vrcp.f32 %v1244_v30  ;;  %v4101_v30 = vld [vmem:[%s5626_s25] ss:$0 sm:$0xff] }
 0x6b6   : > { %v1247_v31 = vpop.xlane.xlu0 %1246 }
 0x6b7   : > { %4805 = vrcp.f32 %v1247_v31  ;;  %v4823_v31 = vld [vmem:[#allocation2] sm:$0xff] }
 0x6ba   : > { %v1356_v38 = vpop.permute.xlu0 %1355 }
 0x6bb   : > { %v1361_v40 = vsel %vm828_vm3, %v1356_v38, 0 }
 0x6bd   : > { %v4804_v32 = vpop.eup %4803 }
 0x6be   : > { %v1250_v36 = vmul.f32 %v4804_v32, %v4800_v26 }
 0x6c1   : > { %v4806_v33 = vpop.eup %4805 }
 0x6c2   : > { %v1251_v37 = vmul.f32 %v4806_v33, %v4802_v28 }
 0x6c4   : > { %v1252_v39 = vpack.c.bf16 %v1251_v37, %v1250_v36  ;;  %v4824_v37 = vld [vmem:[#allocation2 + $0x8] sm:$0xff] }
 0x6c6   : > { %4561 = vmatmul.mubr.msk.bf16.vlgmr.msra.gmra.mrb[16].mxu1 %vm828_vm3, %v1252_v39 }
 0x6c7   : > { %4571 = vmatpush3.bf16.xpose.msra.mxu1 %v1361_v40  ;;  %4572 = vmatprep.mubr.msk.bf16.mxu1 %vm4882_vm2, %v4881_v20 }
 0x6c8   : > { %4582 = vmatprep.subr.bf16.mxu1 %v4881_v20 }
 0x6ce   : > { %4573 = vmatmul.mubr.msk.bf16.vlgmr.msra.gmra.mrb[20].mxu1 %vm828_vm3, %v1354_v34 }
 0x6cf   : > { %4584 = vmatprep.mubr.msk.bf16.mxu1 %vm4882_vm2, %v4881_v20  ;;  %4583 = vmatpush3.bf16.msra.mxu1 %v4654_v4 }
 0x799   : > { %v1293_v42 = vpop.f32.mrb[16].mxu1 }
 0x79a   : > { %v4562_v43 = vpop.f32.mrb[17].mxu1 }
 0x79b   : > { %v1296_v45 = vpop.f32.mrb[18].mxu1 }
 0x79c   : > { %v1300_v46 = vpack.c.bf16 %v1296_v45, %v1293_v42  ;;  %v4563_v47 = vpop.f32.mrb[19].mxu1 }
 0x79e   : > { %4567 = vmatmul.mubr.msk.bf16.vlgmr.msra.gmra.mrb[16].mxu0 %vm828_vm3, %v1300_v46 }
 0x79f   : > { %4578 = vmatprep.mubr.msk.bf16.mxu0 %vm4882_vm2, %v4881_v20 }
 0x7a1   : > { %v1397_v48 = vpop.f32.mrb[20].mxu1 }
 0x7a2   : > { %v1404_v49 = vmul.f32 0.25, %v1397_v48  ;;  %v4574_v50 = vpop.f32.mrb[21].mxu1 }
 0x7a3   : > { %v1400_v51 = vpop.f32.mrb[22].mxu1 }
 0x7a4   : > { %v1405_v52 = vmul.f32 0.25, %v1400_v51  ;;  %v4575_v53 = vpop.f32.mrb[23].mxu1  ;;  %v1406_v54 = vadd.f32 %v1404_v49, %v5136_v44 }
 0x7a5   : > { %v1588_v53 = vld [vmem:[%s5049_s2] sm:$0xff] }
 0x7a6   : > { %v1408_v55 = vsel %vm828_vm3, %v1406_v54, -inf  ;;  %v1407_v56 = vadd.f32 %v1405_v52, %v5136_v44 }
 0x7a7   : > { %1409 = vmax.xlane.f32.xlu1 %v1408_v55  ;;  %v1589_v55 = vld [vmem:[%s5049_s2 + $0x8] sm:$0xff] }
 0x7a8   : > { %v1411_v57 = vsel %vm828_vm3, %v1407_v56, -inf }
 0x7a9   : > { %1412 = vmax.xlane.f32.xlu0 %v1411_v57  ;;  %v1597_v57 = vld [vmem:[%s5049_s2 + $0x48] sm:$0xff] }
 0x834   : > { %v1410_v58 = vpop.xlane.xlu1 %1409 }
 0x835   : > { %v1414_v59 = vsub.f32 %v1406_v54, %v1410_v58  ;;  %v1596_v54 = vld [vmem:[%s5049_s2 + $0x40] sm:$0xff] }
 0x836   : > { %v1413_v20 = vpop.xlane.xlu0 %1412  ;;  %v4104_v58 = vcombine.low %v1588_v53, %v1596_v54 }
 0x837   : > { %v1416_v60 = vmul.f32 1.442695, %v1414_v59  ;;  %v1415_v61 = vsub.f32 %v1407_v56, %v1413_v20  ;;  %v4105_v56 = vcombine.high %v1588_v53, %v1596_v54  ;;  %v4106_v59 = vcombine.low %v1589_v55, %v1597_v57 }
 0x838   : > { %v4107_v20 = vcombine.high %v1589_v55, %v1597_v57  ;;  %v1630_v57 = vld [vmem:[%s5049_s2 + $0x150] sm:$0xff] }
 0x839   : > { %4807 = vpow2.f32 %v1416_v60  ;;  %v1418_v62 = vmul.f32 1.442695, %v1415_v61  ;;  %v1604_v60 = vld [vmem:[%s5049_s2 + $0x80] sm:$0xff] }
 0x83a   : > { %2102 = vmatprep.subr.bf16.mxu1 %v4107_v20  ;;  %v1612_v61 = vld [vmem:[%s5049_s2 + $0xc0] sm:$0xff] }
 0x83b   : > { %4809 = vpow2.f32 %v1418_v62  ;;  %v1605_v62 = vld [vmem:[%s5049_s2 + $0x88] sm:$0xff] }
 0x843   : > { %v4808_v0 = vpop.eup %4807 }
 0x844   : > { %v1420_v1 = vsel %vm828_vm3, %v4808_v0, 0.0 }
 0x845   : > { %v4810_v3 = vpop.eup %4809  ;;  %1421 = vadd.xlane.f32.xlu0 %v1420_v1  ;;  %v1613_v1 = vld [vmem:[%s5049_s2 + $0xc8] sm:$0xff] }
 0x846   : > { %v1423_v44 = vsel %vm828_vm3, %v4810_v3, 0.0  ;;  %v4123_v4 = vcombine.high %v1605_v62, %v1613_v1 }
 0x847   : > { %1424 = vadd.xlane.f32.xlu1 %v1423_v44  ;;  %v4122_v44 = vcombine.low %v1605_v62, %v1613_v1  ;;  %v1646_v1 = vld [vmem:[%s5049_s2 + $0x1d0] sm:$0xff] }
 0x85b   : > { %1431 = vrot.lane.b32.xlu0 %v5115_v35, %s4888_s3  ;;  %s5629_s3 = sld [smem:[#allocation6_spill]] }
 0x861   : > { %p4307_p13 = scmp.ne.s32.totalorder %s5629_s3, 1 }
 0x871   : > { %v1344_v5 = vpop.f32.mrb[16].mxu0 }
 0x872   : > { %v1351_v6 = vadd.f32 %v1344_v5, %v5177_v63  ;;  %v4568_v7 = vpop.f32.mrb[17].mxu0  ;;  %v1620_v5 = vld [vmem:[%s5049_s2 + $0x100] sm:$0xff] }
 0x873   : > { %v1347_v9 = vpop.f32.mrb[18].mxu0  ;;  %v1621_v7 = vld [vmem:[%s5049_s2 + $0x108] sm:$0xff] }
 0x874   : > { %v1352_v10 = vadd.f32 %v1347_v9, %v5179_v2  ;;  %v4569_v11 = vpop.f32.mrb[19].mxu0 }
 0x8d2   : > { %v1422_v12 = vpop.xlane.xlu0 %1421 }
 0x8d3   : > { %4811 = vrcp.f32 %v1422_v12 }
 0x8d4   : > { %v1425_v13 = vpop.xlane.xlu1 %1424 }
 0x8d5   : > { %4813 = vrcp.f32 %v1425_v13 }
 0x8d6   : > { %v1432_v14 = vpop.permute.xlu0 %1431 }
 0x8d7   : > { %4577 = vmatpush3.bf16.msra.mxu0 %v1432_v14  ;;  %v1636_v14 = vld [vmem:[%s5049_s2 + $0x180] sm:$0xff] }
 0x8d8   : > { %2059 = vmatprep.subr.bf16.mxu0 %v4105_v56  ;;  %v1622_v56 = vld [vmem:[%s5049_s2 + $0x110] sm:$0xff] }
 0x8dd   : > { %v4812_v15 = vpop.eup %4811 }
 0x8de   : > { %v1428_v17 = vmul.f32 %v4812_v15, %v4808_v0  ;;  %v4121_v0 = vcombine.high %v1604_v60, %v1612_v61  ;;  %v1644_v15 = vld [vmem:[%s5049_s2 + $0x1c0] sm:$0xff] }
 0x8df   : > { %v4814_v16 = vpop.eup %4813 }
 0x8e0   : > { %v1429_v35 = vmul.f32 %v4814_v16, %v4810_v3  ;;  %v4120_v3 = vcombine.low %v1604_v60, %v1612_v61  ;;  %v1637_v16 = vld [vmem:[%s5049_s2 + $0x188] sm:$0xff]  ;;  %v4141_v61 = vcombine.high %v1622_v56, %v1630_v57 }
 0x8e2   : > { %v1430_v18 = vpack.c.bf16 %v1429_v35, %v1428_v17  ;;  %v4153_v17 = vcombine.high %v1636_v14, %v1644_v15  ;;  %v1645_v35 = vld [vmem:[%s5049_s2 + $0x1c8] sm:$0xff] }
 0x8e4   : > { %4579 = vmatmul.mubr.msk.bf16.vlgmr.msra.gmra.mrb[20].mxu0 %vm828_vm3, %v1430_v18  ;;  %v4152_v18 = vcombine.low %v1636_v14, %v1644_v15 }
 0x8e5   : > { %2091 = vmatprep.mubr.bf16.mxu0 %v4880_v8  ;;  %2060 = vmatpush1.bf16.msra.mxu0 %v4104_v58  ;;  %v1623_v58 = vld [vmem:[%s5049_s2 + $0x118] sm:$0xff] }
 0x8e6   : > { %2061 = vmatprep.subr.bf16.mxu0 %v4121_v0  ;;  %v1638_v0 = vld [vmem:[%s5049_s2 + $0x190] sm:$0xff] }
 0x8e9   : > { %2062 = vmatpush1.bf16.msra.mxu0 %v4120_v3  ;;  %v1639_v3 = vld [vmem:[%s5049_s2 + $0x198] sm:$0xff] }
 0x9b7   : > { %v1471_v63 = vpop.f32.mrb[20].mxu0 }
 0x9b8   : > { %v4580_v22 = vpop.f32.mrb[21].mxu0 }
 0x9b9   : > { %v1474_v2 = vpop.f32.mrb[22].mxu0  ;;  %v4155_v22 = vcombine.high %v1637_v16, %v1645_v35 }
 0x9ba   : > { %v1478_v24 = vpack.c.bf16 %v1474_v2, %v1471_v63  ;;  %v4581_v25 = vpop.f32.mrb[23].mxu0  ;;  %v4154_v63 = vcombine.low %v1637_v16, %v1645_v35  ;;  %v1590_v2 = vld [vmem:[%s5049_s2 + $0x10] sm:$0xff]  ;;  %v1616_v35 = vld [vmem:[%s5049_s2 + $0xe0] sm:$0xff] }
 0x9bb   : > { %v1591_v25 = vld [vmem:[%s5049_s2 + $0x18] sm:$0xff] }
 0x9bc   : > { %4585 = vmatmul.mubr.msk.bf16.vlgmr.msra.gmra.mrb[24].mxu1 %vm828_vm3, %v1478_v24  ;;  %v1598_v24 = vld [vmem:[%s5049_s2 + $0x50] sm:$0xff] }
 0x9bd   : > { %2134 = vmatprep.mubr.bf16.mxu1 %v4880_v8  ;;  %2103 = vmatpush1.bf16.msra.mxu1 %v4106_v59  ;;  %v1631_v59 = vld [vmem:[%s5049_s2 + $0x158] sm:$0xff] }
 0x9be   : > { %2104 = vmatprep.subr.bf16.mxu1 %v4123_v4  ;;  %v4143_v62 = vcombine.high %v1623_v58, %v1631_v59  ;;  %v4140_v4 = vcombine.low %v1622_v56, %v1630_v57  ;;  %v1618_v56 = vld [vmem:[%s5049_s2 + $0xf0] sm:$0xff]  ;;  %v1611_v57 = vld [vmem:[%s5049_s2 + $0xb8] sm:$0xff] }
 0x9c1   : > { %2105 = vmatpush1.bf16.msra.mxu1 %v4122_v44  ;;  %v1647_v44 = vld [vmem:[%s5049_s2 + $0x1d8] sm:$0xff] }
 0x9c2   : > { %v4158_v14 = vcombine.low %v1639_v3, %v1647_v44 }
 0xa8f   : > { %v1522_v26 = vpop.f32.mrb[24].mxu1 }
 0xa90   : > { %v1529_v27 = vadd.f32 %v1522_v26, %v1351_v6  ;;  %v4586_v28 = vpop.f32.mrb[25].mxu1  ;;  %v1628_v6 = vld [vmem:[%s5049_s2 + $0x140] sm:$0xff]  ;;  %v4108_v26 = vcombine.low %v1590_v2, %v1598_v24 }
 0xa91   : > { %v1525_v29 = vpop.f32.mrb[26].mxu1  ;;  %v4137_v9 = vcombine.high %v1620_v5, %v1628_v6  ;;  %v4136_v11 = vcombine.low %v1620_v5, %v1628_v6  ;;  %v1599_v28 = vld [vmem:[%s5049_s2 + $0x58] sm:$0xff]  ;;  %v4142_v5 = vcombine.low %v1623_v58, %v1631_v59  ;;  %v4157_v6 = vcombine.high %v1638_v0, %v1646_v1 }
 0xa92   : > { %v1531_v32 = vadd.f32 %v4823_v31, %v1529_v27  ;;  %v1530_v33 = vadd.f32 %v1525_v29, %v1352_v10  ;;  %v4587_v36 = vpop.f32.mrb[27].mxu1  ;;  %v1629_v10 = vld [vmem:[%s5049_s2 + $0x148] sm:$0xff]  ;;  %v4109_v27 = vcombine.high %v1590_v2, %v1598_v24  ;;  %v4110_v29 = vcombine.low %v1591_v25, %v1599_v28  ;;  %v1619_v58 = vld [vmem:[%s5049_s2 + $0xf8] sm:$0xff] }
 0xa93   : > { %v4138_v12 = vcombine.low %v1621_v7, %v1629_v10  ;;  %v4139_v13 = vcombine.high %v1621_v7, %v1629_v10  ;;  %2063 = vmatprep.subr.bf16.mxu0 %v4137_v9  ;;  %v4159_v7 = vcombine.high %v1639_v3, %v1647_v44  ;;  %v1592_v9 = vld [vmem:[%s5049_s2 + $0x20] sm:$0xff]  ;;  %v1635_v3 = vld [vmem:[%s5049_s2 + $0x178] sm:$0xff] }
 0xa94   : > { %v1532_v38 = vadd.f32 %v4824_v37, %v1530_v33  ;;  %v1540_v39 = vadd.f32 %v4101_v30, %v1531_v32  ;;  %2064 = vmatpush1.bf16.msra.mxu0 %v4136_v11  ;;  %v1600_v10 = vld [vmem:[%s5049_s2 + $0x60] sm:$0xff]  ;;  %v1593_v11 = vld [vmem:[%s5049_s2 + $0x28] sm:$0xff] }
 0xa95   : > { %2106 = vmatprep.subr.bf16.mxu1 %v4139_v13  ;;  %2065 = vmatprep.subr.bf16.mxu0 %v4153_v17  ;;  %v4156_v13 = vcombine.low %v1638_v0, %v1646_v1  ;;  %v4113_v15 = vcombine.high %v1592_v9, %v1600_v10  ;;  %v1608_v17 = vld [vmem:[%s5049_s2 + $0xa0] sm:$0xff]  ;;  %v1634_v0 = vld [vmem:[%s5049_s2 + $0x170] sm:$0xff]  ;;  %v1627_v1 = vld [vmem:[%s5049_s2 + $0x138] sm:$0xff] }
 0xa96   : > { %v1542_v40 = vsel %vm763_vm1, %v1540_v39, 0.0  ;;  %v1541_v34 = vadd.f32 %v4101_v30, %v1532_v38  ;;  %2107 = vmatpush1.bf16.msra.mxu1 %v4138_v12  ;;  %v4111_v30 = vcombine.high %v1591_v25, %v1599_v28  ;;  %v1601_v12 = vld [vmem:[%s5049_s2 + $0x68] sm:$0xff]  ;;  %v4129_v24 = vcombine.high %v1608_v17, %v1616_v35 }
 0xa97   : > { %1543 = vadd.xlane.f32.xlu1 %v1542_v40  ;;  %2108 = vmatprep.subr.bf16.mxu1 %v4155_v22  ;;  %v4115_v16 = vcombine.high %v1593_v11, %v1601_v12  ;;  %v4112_v22 = vcombine.low %v1592_v9, %v1600_v10  ;;  %v4114_v2 = vcombine.low %v1593_v11, %v1601_v12  ;;  %v1625_v28 = vld [vmem:[%s5049_s2 + $0x128] sm:$0xff]  ;;  %v1650_v9 = vld [vmem:[%s5049_s2 + $0x1f0] sm:$0xff]  ;;  %v1643_v10 = vld [vmem:[%s5049_s2 + $0x1b8] sm:$0xff] }
 0xa98   : > { %v1545_v41 = vsel %vm763_vm1, %v1541_v34, 0.0  ;;  %2066 = vmatpush1.bf16.msra.mxu0 %v4152_v18  ;;  %v1609_v18 = vld [vmem:[%s5049_s2 + $0xa8] sm:$0xff]  ;;  %v1651_v11 = vld [vmem:[%s5049_s2 + $0x1f8] sm:$0xff] }
 0xa99   : > { %2145 = vmatprep.subr.bf16.mxu0 %v4109_v27  ;;  %v1632_v27 = vld [vmem:[%s5049_s2 + $0x160] sm:$0xff] }
 0xa9a   : > { %2109 = vmatpush1.bf16.msra.mxu1 %v4154_v63  ;;  %v1617_v63 = vld [vmem:[%s5049_s2 + $0xe8] sm:$0xff] }
 0xa9b   : > { %1546 = vadd.xlane.f32.xlu1 %v1545_v41  ;;  %2188 = vmatprep.subr.bf16.mxu1 %v4111_v30  ;;  %v4131_v25 = vcombine.high %v1609_v18, %v1617_v63  ;;  %v4128_v30 = vcombine.low %v1608_v17, %v1616_v35  ;;  %v4166_v17 = vcombine.low %v1643_v10, %v1651_v11  ;;  %v4656_v35 = vld [vmem:[%s5064_s28 + $0xc0] sm:$0xff]  }
 0xb24   : > { %v1544_v42 = vpop.xlane.xlu1 %1543 }
 0xb25   : > { %v1549_v43 = vmul.f32 0.015625, %v1544_v42 }
 0xb27   : > { %v5228_v45 = vsub.f32 %v1540_v39, %v1549_v43 }
 0xb28   : > { %v1547_v46 = vpop.xlane.xlu1 %1546 }
 0xb29   : > { %v1550_v47 = vmul.f32 0.015625, %v1547_v46  ;;  %v1553_v48 = vmul.f32 %v5228_v45, %v5228_v45  ;;  %v4103_v46 = vld [vmem:[%s5628_s27] ss:$0 sm:$0xff] }
 0xb2b   : > { %v5232_v49 = vsub.f32 %v1541_v34, %v1550_v47  ;;  %v1555_v50 = vsel %vm763_vm1, %v1553_v48, 0.0  ;;  %v4102_v34 = vld [vmem:[%s5627_s23] ss:$0 sm:$0xff]  ;;  %v1614_v48 = vld [vmem:[%s5049_s2 + $0xd0] sm:$0xff] }
 0xb2c   : > { %1556 = vadd.xlane.f32.xlu1 %v1555_v50  ;;  %v1607_v50 = vld [vmem:[%s5049_s2 + $0x98] sm:$0xff] }
 0xb2d   : > { %v1554_v51 = vmul.f32 %v5232_v49, %v5232_v49 }
 0xb2f   : > { %v1558_v52 = vsel %vm763_vm1, %v1554_v51, 0.0  ;;  %v1615_v51 = vld [vmem:[%s5049_s2 + $0xd8] sm:$0xff] }
 0xb30   : > { %1559 = vadd.xlane.f32.xlu1 %v1558_v52  ;;  %v4126_v60 = vcombine.low %v1607_v50, %v1615_v51 }
 0xbb9   : > { %v1557_v31 = vpop.xlane.xlu1 %1556 }
 0xbba   : > { %v1561_v32 = vmul.f32 0.015625, %v1557_v31  ;;  %v4130_v31 = vcombine.low %v1609_v18, %v1617_v63  ;;  %v4657_v18 = vld [vmem:[%s5064_s28] sm:$0xff]  }
 0xbbb   : > { %v4658_v63 = vld [vmem:[%s5064_s28 + $0x80] sm:$0xff]  }
 0xbbc   : > { %v1563_v33 = vadd.f32 1e-05, %v1561_v32 }
 0xbbd   : > { %v1560_v36 = vpop.xlane.xlu1 %1559 }
 0xbbe   : > { %4815 = vrsqrt.f32 %v1563_v33  ;;  %v1562_v37 = vmul.f32 0.015625, %v1560_v36  ;;  %v1640_v36 = vld [vmem:[%s5049_s2 + $0x1a0] sm:$0xff] }
 0xbc0   : > { %v1564_v38 = vadd.f32 1e-05, %v1562_v37  ;;  %v1648_v37 = vld [vmem:[%s5049_s2 + $0x1e0] sm:$0xff] }
 0xbc2   : > { %4817 = vrsqrt.f32 %v1564_v38  ;;  %v1641_v38 = vld [vmem:[%s5049_s2 + $0x1a8] sm:$0xff] }
 0xbc8   : > { %v4816_v39 = vpop.eup %4815 }
 0xbc9   : > { %v1567_v40 = vmul.f32 %v4816_v39, %v5228_v45  ;;  %v1606_v45 = vld [vmem:[%s5049_s2 + $0x90] sm:$0xff]  ;;  %v1649_v39 = vld [vmem:[%s5049_s2 + $0x1e8] sm:$0xff] }
 0xbca   : > { %v4125_v55 = vcombine.high %v1606_v45, %v1614_v48  ;;  %v4124_v20 = vcombine.low %v1606_v45, %v1614_v48  ;;  %v1603_v45 = vld [vmem:[%s5049_s2 + $0x78] sm:$0xff]  ;;  %v4160_v48 = vcombine.low %v1640_v36, %v1648_v37 }
 0xbcb   : > { %v1576_v42 = vmul.f32 %v4102_v34, %v1567_v40 }
 0xbcc   : > { %v4818_v41 = vpop.eup %4817 }
 0xbcd   : > { %v1568_v43 = vmul.f32 %v4818_v41, %v5232_v49  ;;  %v5274_v52 = vadd.f32 %v4103_v46, %v1576_v42  ;;  %v4127_v49 = vcombine.high %v1607_v50, %v1615_v51  ;;  %v4161_v41 = vcombine.high %v1640_v36, %v1648_v37  ;;  %v4672_v36 = vld [vmem:[%s5064_s28 + $0xe0] sm:$0xff]  }
 0xbce   : > { %v4163_v42 = vcombine.high %v1641_v38, %v1649_v39  ;;  %v4162_v50 = vcombine.low %v1641_v38, %v1649_v39  ;;  %v4673_v37 = vld [vmem:[%s5064_s28 + $0x20] sm:$0xff]   ;;  %v4675_v39 = vld [vmem:[%s5064_s28 + $0x68] sm:$0xff]  }
 0xbcf   : > { %v1577_v47 = vmul.f32 %v4102_v34, %v1568_v43  ;;  %v1594_v43 = vld [vmem:[%s5049_s2 + $0x30] sm:$0xff]  ;;  %v4674_v38 = vld [vmem:[%s5064_s28 + $0xa0] sm:$0xff]  }
 0xbd1   : > { %v5276_v53 = vadd.f32 %v4103_v46, %v1577_v47  ;;  %v1602_v46 = vld [vmem:[%s5049_s2 + $0x70] sm:$0xff]  ;;  %v1595_v47 = vld [vmem:[%s5049_s2 + $0x38] sm:$0xff] }
 0xbd2   : > { %v4117_v51 = vcombine.high %v1594_v43, %v1602_v46  ;;  %v4116_v59 = vcombine.low %v1594_v43, %v1602_v46  ;;  %v4680_v43 = vld [vmem:[%s5064_s28 + $0xf0] sm:$0xff]  }
 0xbd3   : > { %v5280_v54 = vpack.c.bf16 %v5276_v53, %v5274_v52  ;;  %v4681_v46 = vld [vmem:[%s5064_s28 + $0x30] sm:$0xff]  }
 0xbd5   : > { %4168 = vmatmul.mubr.msk.bf16.vlgmr.msra.gmra.mrb[24].mxu0 %vm763_vm1, %v5280_v54  ;;  %4169 = vmatmul.mubr.msk.bf16.vlgmr.msra.gmra.mrb[28].mxu1 %vm763_vm1, %v5280_v54 }
 0xbd6   : > { %2146 = vmatpush1.bf16.msra.mxu0 %v4108_v26  ;;  %2189 = vmatpush1.bf16.msra.mxu1 %v4110_v29  ;;  %v1624_v26 = vld [vmem:[%s5049_s2 + $0x120] sm:$0xff]  ;;  %v1633_v29 = vld [vmem:[%s5049_s2 + $0x168] sm:$0xff] }
 0xbd7   : > { %2147 = vmatprep.subr.bf16.mxu0 %v4125_v55  ;;  %2190 = vmatprep.subr.bf16.mxu1 %v4127_v49  ;;  %v4145_v32 = vcombine.high %v1624_v26, %v1632_v27  ;;  %v4147_v33 = vcombine.high %v1625_v28, %v1633_v29  ;;  %v4144_v40 = vcombine.low %v1624_v26, %v1632_v27  ;;  %v1610_v49 = vld [vmem:[%s5049_s2 + $0xb0] sm:$0xff] }
 0xbd8   : > { %2177 = vmatprep.mubr.bf16.mxu0 %v4880_v8  ;;  %2220 = vmatprep.mubr.bf16.mxu1 %v4880_v8  ;;  %v4146_v34 = vcombine.low %v1625_v28, %v1633_v29  ;;  %v4119_v55 = vcombine.high %v1595_v47, %v1603_v45  ;;  %v4132_v44 = vcombine.low %v1610_v49, %v1618_v56  ;;  %v4663_v26 = vld [vmem:[%s5064_s28 + $0x50] sm:$0xff]  }
 0xbd9   : > { %v4664_v27 = vld [vmem:[%s5064_s28 + $0xd0] sm:$0xff]  }
 0xbda   : > { %2148 = vmatpush1.bf16.msra.mxu0 %v4124_v20  ;;  %2191 = vmatpush1.bf16.msra.mxu1 %v4126_v60  ;;  %v4118_v20 = vcombine.low %v1595_v47, %v1603_v45  ;;  %v4133_v60 = vcombine.high %v1610_v49, %v1618_v56  ;;  %v4665_v28 = vld [vmem:[%s5064_s28 + $0x10] sm:$0xff]   ;;  %v4683_v45 = vld [vmem:[%s5064_s28 + $0x78] sm:$0xff]   ;;  %v4688_v49 = vld [vmem:[%s5064_s28 + $0x1c0] sm:$0xff]   ;;  %v1682_v56 = vsub.s32 6, %v5096_v19 }
 0xbdb   : > { %2149 = vmatprep.subr.bf16.mxu0 %v4141_v61  ;;  %2192 = vmatprep.subr.bf16.mxu1 %v4143_v62  ;;  %v4135_v61 = vcombine.high %v1611_v57, %v1619_v58  ;;  %v1626_v62 = vld [vmem:[%s5049_s2 + $0x130] sm:$0xff] }
 0xbdc   : > { %v4148_v12 = vcombine.low %v1626_v62, %v1634_v0  ;;  %v4666_v29 = vld [vmem:[%s5064_s28 + $0x90] sm:$0xff]  }
 0xbdd   : > { %v4682_v47 = vld [vmem:[%s5064_s28 + $0xb0] sm:$0xff]  }
 0xbde   : > { %2150 = vmatpush1.bf16.msra.mxu0 %v4140_v4  ;;  %2193 = vmatpush1.bf16.msra.mxu1 %v4142_v5  ;;  %v4134_v4 = vcombine.low %v1611_v57, %v1619_v58  ;;  %v4149_v5 = vcombine.high %v1626_v62, %v1634_v0  ;;  %v5380_v57 = vld [vmem:[%s5054_s1 + $0x8] sm:$0xff] }
 0xbdf   : > { %2151 = vmatprep.subr.bf16.mxu0 %v4157_v6  ;;  %2194 = vmatprep.subr.bf16.mxu1 %v4159_v7  ;;  %v4151_v6 = vcombine.high %v1627_v1, %v1635_v3  ;;  %v1642_v7 = vld [vmem:[%s5049_s2 + $0x1b0] sm:$0xff]  ;;  %v5383_v58 = vrot.slane %v5380_v57, %v1682_v56 }
 0xbe2   : > { %2152 = vmatpush1.bf16.msra.mxu0 %v4156_v13  ;;  %2195 = vmatpush1.bf16.msra.mxu1 %v4158_v14  ;;  %v4150_v13 = vcombine.low %v1627_v1, %v1635_v3  ;;  %v4165_v14 = vcombine.high %v1642_v7, %v1650_v9 }
 0xbe3   : > { %2231 = vmatprep.subr.bf16.mxu0 %v4113_v15  ;;  %2274 = vmatprep.subr.bf16.mxu1 %v4115_v16  ;;  %v4167_v15 = vcombine.high %v1643_v10, %v1651_v11  ;;  %v4164_v16 = vcombine.low %v1642_v7, %v1650_v9 }
 0xbe5   : > { %4170 = vmatmul.mubr.msk.bf16.vlgmr.msra.gmra.mrb[28].mxu0 %vm763_vm1, %v5280_v54  ;;  %4171 = vmatmul.mubr.msk.bf16.vlgmr.msra.gmra.mrb[32].mxu1 %vm763_vm1, %v5280_v54 }
 0xbe6   : > { %2232 = vmatpush1.bf16.msra.mxu0 %v4112_v22  ;;  %2275 = vmatpush1.bf16.msra.mxu1 %v4114_v2  ;;  %v4659_v22 = vld [vmem:[%s5064_s28 + $0x48] sm:$0xff]  }
 0xbe7   : > { %2233 = vmatprep.subr.bf16.mxu0 %v4129_v24  ;;  %2276 = vmatprep.subr.bf16.mxu1 %v4131_v25  ;;  %v4660_v2 = vld [vmem:[%s5064_s28 + $0xc8] sm:$0xff]  }
 0xbe8   : > { %2263 = vmatprep.mubr.bf16.mxu0 %v4880_v8  ;;  %2306 = vmatprep.mubr.bf16.mxu1 %v4880_v8  ;;  %v4661_v24 = vld [vmem:[%s5064_s28 + $0x8] sm:$0xff]  }
 0xbe9   : > { %v4662_v25 = vld [vmem:[%s5064_s28 + $0x88] sm:$0xff]  }
 0xbea   : > { %2234 = vmatpush1.bf16.msra.mxu0 %v4128_v30  ;;  %2277 = vmatpush1.bf16.msra.mxu1 %v4130_v31  ;;  %v4668_v30 = vld [vmem:[%s5064_s28 + $0xd8] sm:$0xff]  }
 0xbeb   : > { %2235 = vmatprep.subr.bf16.mxu0 %v4145_v32  ;;  %2278 = vmatprep.subr.bf16.mxu1 %v4147_v33  ;;  %v4669_v31 = vld [vmem:[%s5064_s28 + $0x18] sm:$0xff]   ;;  %v4671_v33 = vld [vmem:[%s5064_s28 + $0x60] sm:$0xff]  }
 0xbec   : > { %v4670_v32 = vld [vmem:[%s5064_s28 + $0x98] sm:$0xff]  }
 0xbee   : > { %2236 = vmatpush1.bf16.msra.mxu0 %v4144_v40  ;;  %2279 = vmatpush1.bf16.msra.mxu1 %v4146_v34  ;;  %v4676_v40 = vld [vmem:[%s5064_s28 + $0xe8] sm:$0xff]  }
 0xbef   : > { %2237 = vmatprep.subr.bf16.mxu0 %v4161_v41  ;;  %2280 = vmatprep.subr.bf16.mxu1 %v4163_v42  ;;  %v4677_v34 = vld [vmem:[%s5064_s28 + $0x28] sm:$0xff]   ;;  %v4679_v42 = vld [vmem:[%s5064_s28 + $0x70] sm:$0xff]  }
 0xbf0   : > { %v4678_v41 = vld [vmem:[%s5064_s28 + $0xa8] sm:$0xff]  }
 0xbf2   : > { %2238 = vmatpush1.bf16.msra.mxu0 %v4160_v48  ;;  %2281 = vmatpush1.bf16.msra.mxu1 %v4162_v50  ;;  %v4684_v48 = vld [vmem:[%s5064_s28 + $0xf8] sm:$0xff]  }
 0xbf3   : > { %2317 = vmatprep.subr.bf16.mxu0 %v4117_v51  ;;  %2360 = vmatprep.subr.bf16.mxu1 %v4119_v55  ;;  %v4685_v50 = vld [vmem:[%s5064_s28 + $0x38] sm:$0xff]   ;;  %v4687_v55 = vld [vmem:[%s5064_s28 + $0x140] sm:$0xff]  }
 0xbf4   : > { %v4686_v51 = vld [vmem:[%s5064_s28 + $0xb8] sm:$0xff]  }
 0xbf5   : > { %4172 = vmatmul.mubr.msk.bf16.vlgmr.msra.gmra.mrb[32].mxu0 %vm763_vm1, %v5280_v54  ;;  %4173 = vmatmul.mubr.msk.bf16.vlgmr.msra.gmra.mrb[36].mxu1 %vm763_vm1, %v5280_v54 }
 0xbf6   : > { %2318 = vmatpush1.bf16.msra.mxu0 %v4116_v59  ;;  %2361 = vmatpush1.bf16.msra.mxu1 %v4118_v20  ;;  %v1666_v59 = vsub.s32 2, %v5096_v19  ;;  %v1652_v20 = vld [vmem:[%s5054_s1] sm:$0xff] }
 0xbf7   : > { %2319 = vmatprep.subr.bf16.mxu0 %v4133_v60  ;;  %2362 = vmatprep.subr.bf16.mxu1 %v4135_v61  ;;  %v1670_v60 = vsub.s32 3, %v5096_v19  ;;  %v1659_v61 = vrot.slane %v1652_v20, %v5101_v21  ;;  %v1663_v0 = vrot.slane %v1652_v20, %v5105_v23 }
 0xbf8   : > { %2349 = vmatprep.mubr.bf16.mxu0 %v4880_v8  ;;  %2392 = vmatprep.mubr.bf16.mxu1 %v4880_v8  ;;  %v4655_v8 = vld [vmem:[%s5064_s28 + $0x40] sm:$0xff]   ;;  %v1667_v62 = vrot.slane %v1652_v20, %v1666_v59 }
 0xbf9   : > { %v1671_v1 = vrot.slane %v1652_v20, %v1670_v60 }
 0xbfa   : > { %2320 = vmatpush1.bf16.msra.mxu0 %v4132_v44  ;;  %2363 = vmatpush1.bf16.msra.mxu1 %v4134_v4 }
 0xbfb   : > { %2321 = vmatprep.subr.bf16.mxu0 %v4149_v5  ;;  %2364 = vmatprep.subr.bf16.mxu1 %v4151_v6 }
 0xbfe   : > { %2322 = vmatpush1.bf16.msra.mxu0 %v4148_v12  ;;  %2365 = vmatpush1.bf16.msra.mxu1 %v4150_v13 }
 0xbff   : > { %2323 = vmatprep.subr.bf16.mxu0 %v4165_v14  ;;  %2366 = vmatprep.subr.bf16.mxu1 %v4167_v15 }
 0xc02   : > { %2324 = vmatpush1.bf16.msra.mxu0 %v4164_v16  ;;  %2367 = vmatpush1.bf16.msra.mxu1 %v4166_v17 }
 0xc03   : > { %4340 = vmatprep.subr.bf16.mxu0 %v4655_v8  ;;  %4362 = vmatprep.subr.bf16.mxu1 %v4656_v35 }
 0xc05   : > { %4174 = vmatmul.mubr.msk.bf16.vlgmr.msra.gmra.mrb[36].mxu0 %vm763_vm1, %v5280_v54  ;;  %4175 = vmatmul.mubr.msk.bf16.vlgmr.msra.gmra.mrb[40].mxu1 %vm763_vm1, %v5280_v54  ;;  %v4667_v54 = vld [vmem:[%s5064_s28 + $0x58] sm:$0xff]  }
 0xc06   : > { %4341 = vmatpush3.bf16.msra.mxu0 %v4657_v18  ;;  %4363 = vmatpush3.bf16.msra.mxu1 %v4658_v63 }
 0xc07   : > { %4342 = vmatprep.subr.bf16.mxu0 %v4659_v22  ;;  %4364 = vmatprep.subr.bf16.mxu1 %v4660_v2 }
 0xc0a   : > { %4343 = vmatpush3.bf16.msra.mxu0 %v4661_v24  ;;  %4365 = vmatpush3.bf16.msra.mxu1 %v4662_v25 }
 0xc0b   : > { %4344 = vmatprep.subr.bf16.mxu0 %v4663_v26  ;;  %4366 = vmatprep.subr.bf16.mxu1 %v4664_v27 }
 0xc0e   : > { %4345 = vmatpush3.bf16.msra.mxu0 %v4665_v28  ;;  %4367 = vmatpush3.bf16.msra.mxu1 %v4666_v29 }
 0xc0f   : > { %4346 = vmatprep.subr.bf16.mxu0 %v4667_v54  ;;  %4368 = vmatprep.subr.bf16.mxu1 %v4668_v30  ;;  %v4689_v30 = vld [vmem:[%s5064_s28 + $0x100] sm:$0xff]  }
 0xc12   : > { %4347 = vmatpush3.bf16.msra.mxu0 %v4669_v31  ;;  %4369 = vmatpush3.bf16.msra.mxu1 %v4670_v32  ;;  %v4690_v31 = vld [vmem:[%s5064_s28 + $0x180] sm:$0xff]   ;;  %v4691_v32 = vld [vmem:[%s5064_s28 + $0x148] sm:$0xff]  }
 0xc13   : > { %4348 = vmatprep.subr.bf16.mxu0 %v4671_v33  ;;  %4370 = vmatprep.subr.bf16.mxu1 %v4672_v36  ;;  %v4692_v33 = vld [vmem:[%s5064_s28 + $0x1c8] sm:$0xff]   ;;  %v1674_v36 = vsub.s32 4, %v5096_v19 }
 0xc16   : > { %4349 = vmatpush3.bf16.msra.mxu0 %v4673_v37  ;;  %4371 = vmatpush3.bf16.msra.mxu1 %v4674_v38  ;;  %v1678_v37 = vsub.s32 5, %v5096_v19  ;;  %v1686_v38 = vsub.s32 7, %v5096_v19 }
 0xc17   : > { %4350 = vmatprep.subr.bf16.mxu0 %v4675_v39  ;;  %4372 = vmatprep.subr.bf16.mxu1 %v4676_v40  ;;  %v4693_v39 = vld [vmem:[%s5064_s28 + $0x108] sm:$0xff]  }
 0xc18   : > { %v4694_v40 = vld [vmem:[%s5064_s28 + $0x188] sm:$0xff]  }
 0xc1a   : > { %4351 = vmatpush3.bf16.msra.mxu0 %v4677_v34  ;;  %4373 = vmatpush3.bf16.msra.mxu1 %v4678_v41  ;;  %v1675_v34 = vrot.slane %v1652_v20, %v1674_v36  ;;  %v1683_v41 = vrot.slane %v1652_v20, %v1682_v56 }
 0xc1b   : > { %4352 = vmatprep.subr.bf16.mxu0 %v4679_v42  ;;  %4374 = vmatprep.subr.bf16.mxu1 %v4680_v43  ;;  %v4695_v42 = vld [vmem:[%s5064_s28 + $0x150] sm:$0xff]  }
 0xc1c   : > { %v4696_v43 = vld [vmem:[%s5064_s28 + $0x1d0] sm:$0xff]  }
 0xc1e   : > { %4353 = vmatpush3.bf16.msra.mxu0 %v4681_v46  ;;  %4375 = vmatpush3.bf16.msra.mxu1 %v4682_v47  ;;  %v1679_v46 = vrot.slane %v1652_v20, %v1678_v37  ;;  %v1687_v47 = vrot.slane %v1652_v20, %v1686_v38 }
 0xc1f   : > { %4354 = vmatprep.subr.bf16.mxu0 %v4683_v45  ;;  %4376 = vmatprep.subr.bf16.mxu1 %v4684_v48 }
 0xc22   : > { %4355 = vmatpush3.bf16.msra.mxu0 %v4685_v50  ;;  %4377 = vmatpush3.bf16.msra.mxu1 %v4686_v51  ;;  %v4697_v50 = vld [vmem:[%s5064_s28 + $0x110] sm:$0xff]  }
 0xc23   : > { %4384 = vmatprep.subr.bf16.mxu0 %v4687_v55  ;;  %4406 = vmatprep.subr.bf16.mxu1 %v4688_v49  ;;  %v4698_v51 = vld [vmem:[%s5064_s28 + $0x190] sm:$0xff]  }
 0xca8   : > { %v2093_v3 = vpop.f32.mrb[24].mxu0  ;;  %v2136_v44 = vpop.f32.mrb[28].mxu1 }
 0xca9   : > { %v2094_v4 = vadd.f32 %v2093_v3, %v1659_v61  ;;  %v2137_v5 = vadd.f32 %v2136_v44, %v1667_v62  ;;  %v2095_v6 = vpop.f32.mrb[25].mxu0  ;;  %v2138_v7 = vpop.f32.mrb[29].mxu1 }
 0xcaa   : > { %v2096_v9 = vadd.f32 %v2095_v6, %v1663_v0  ;;  %v2139_v10 = vadd.f32 %v2138_v7, %v1671_v1  ;;  %v2097_v11 = vpop.f32.mrb[26].mxu0  ;;  %v2140_v12 = vpop.f32.mrb[30].mxu1 }
 0xcab   : > { %v2098_v13 = vadd.f32 %v2097_v11, %v1659_v61  ;;  %v2141_v14 = vadd.f32 %v2140_v12, %v1667_v62  ;;  %v2099_v15 = vpop.f32.mrb[27].mxu0  ;;  %v2142_v16 = vpop.f32.mrb[31].mxu1  ;;  %v2403_v35 = vmax.f32 %v2094_v4, 0.0  ;;  %v2405_v18 = vmax.f32 %v2137_v5, 0.0  ;;  %v4699_v62 = vld [vmem:[%s5064_s28 + $0x158] sm:$0xff]  }
 0xcac   : > { %v2100_v17 = vadd.f32 %v2099_v15, %v1663_v0  ;;  %v2143_v8 = vadd.f32 %v2142_v16, %v1671_v1  ;;  %v2404_v2 = vmax.f32 %v2096_v9, 0.0  ;;  %v2406_v24 = vmax.f32 %v2139_v10, 0.0  ;;  %v4700_v0 = vld [vmem:[%s5064_s28 + $0x1d8] sm:$0xff]  }
 0xcad   : > { %v2419_v63 = vmax.f32 %v2098_v13, 0.0  ;;  %v2421_v22 = vmax.f32 %v2141_v14, 0.0  ;;  %v4701_v11 = vld [vmem:[%s5064_s28 + $0x118] sm:$0xff]  }
 0xcae   : > { %v2420_v25 = vmax.f32 %v2100_v17, 0.0  ;;  %v2422_v26 = vmax.f32 %v2143_v8, 0.0  ;;  %v4702_v12 = vld [vmem:[%s5064_s28 + $0x198] sm:$0xff]   ;;  %v4703_v17 = vld [vmem:[%s5064_s28 + $0x160] sm:$0xff]  }
 0xcaf   : > { %v2435_v27 = vpack.c.bf16 %v2419_v63, %v2403_v35  ;;  %v2437_v28 = vpack.c.bf16 %v2421_v22, %v2405_v18  ;;  %v4704_v8 = vld [vmem:[%s5064_s28 + $0x1e0] sm:$0xff]  }
 0xcb0   : > { %v2436_v29 = vpack.c.bf16 %v2420_v25, %v2404_v2  ;;  %v2438_v54 = vpack.c.bf16 %v2422_v26, %v2406_v24 }
 0xcb2   : > { %3514 = vmatprep.mubr.bf16.mxu0 %v2436_v29  ;;  %3555 = vmatprep.mubr.bf16.mxu1 %v2438_v54  ;;  %v4707_v29 = vld [vmem:[%s5064_s28 + $0x168] sm:$0xff]  }
 0xcb3   : > { %3515 = vmatmul.mubr.bf16.vlgmr.msra.gmra.mrb[40].mxu0 %v2435_v27  ;;  %3556 = vmatmul.mubr.bf16.vlgmr.msra.gmra.mrb[44].mxu1 %v2437_v28  ;;  %v4705_v27 = vld [vmem:[%s5064_s28 + $0x120] sm:$0xff]   ;;  %v4708_v54 = vld [vmem:[%s5064_s28 + $0x1e8] sm:$0xff]  }
 0xcb4   : > { %4385 = vmatpush3.bf16.msra.mxu0 %v4689_v30  ;;  %4407 = vmatpush3.bf16.msra.mxu1 %v4690_v31  ;;  %v4706_v28 = vld [vmem:[%s5064_s28 + $0x1a0] sm:$0xff]   ;;  %v4709_v30 = vld [vmem:[%s5064_s28 + $0x128] sm:$0xff]  }
 0xcb5   : > { %4386 = vmatprep.subr.bf16.mxu0 %v4691_v32  ;;  %4408 = vmatprep.subr.bf16.mxu1 %v4692_v33  ;;  %v4710_v31 = vld [vmem:[%s5064_s28 + $0x1a8] sm:$0xff]   ;;  %v1691_v32 = vrot.slane %v5380_v57, %v5101_v21  ;;  %v1699_v33 = vrot.slane %v5380_v57, %v1666_v59  ;;  %v4713_v21 = vld [vmem:[%s5064_s28 + $0x130] sm:$0xff]  }
 0xcb8   : > { %v2179_v45 = vpop.f32.mrb[28].mxu0  ;;  %v2222_v48 = vpop.f32.mrb[32].mxu1  ;;  %4387 = vmatpush3.bf16.msra.mxu0 %v4693_v39  ;;  %4409 = vmatpush3.bf16.msra.mxu1 %v4694_v40  ;;  %v4711_v39 = vld [vmem:[%s5064_s28 + $0x170] sm:$0xff]  }
 0xcb9   : > { %v2180_v55 = vadd.f32 %v2179_v45, %v1675_v34  ;;  %v2223_v49 = vadd.f32 %v2222_v48, %v1683_v41  ;;  %v2181_v61 = vpop.f32.mrb[29].mxu0  ;;  %v2224_v56 = vpop.f32.mrb[33].mxu1  ;;  %4388 = vmatprep.subr.bf16.mxu0 %v4695_v42  ;;  %4410 = vmatprep.subr.bf16.mxu1 %v4696_v43  ;;  %v4712_v40 = vld [vmem:[%s5064_s28 + $0x1f0] sm:$0xff]  }
 0xcba   : > { %v2182_v1 = vadd.f32 %v2181_v61, %v1679_v46  ;;  %v2225_v3 = vadd.f32 %v2224_v56, %v1687_v47  ;;  %v2183_v44 = vpop.f32.mrb[30].mxu0  ;;  %v2226_v20 = vpop.f32.mrb[34].mxu1 }
 0xcbb   : > { %v2184_v4 = vadd.f32 %v2183_v44, %v1675_v34  ;;  %v2227_v5 = vadd.f32 %v2226_v20, %v1683_v41  ;;  %v2185_v6 = vpop.f32.mrb[31].mxu0  ;;  %v2228_v7 = vpop.f32.mrb[35].mxu1  ;;  %v2407_v13 = vmax.f32 %v2180_v55, 0.0  ;;  %v2409_v14 = vmax.f32 %v2223_v49, 0.0  ;;  %v4717_v44 = vld [vmem:[%s5064_s28 + $0x138] sm:$0xff]  }
 0xcbc   : > { %v2186_v9 = vadd.f32 %v2185_v6, %v1679_v46  ;;  %v2229_v10 = vadd.f32 %v2228_v7, %v1687_v47  ;;  %4389 = vmatpush3.bf16.msra.mxu0 %v4697_v50  ;;  %4411 = vmatpush3.bf16.msra.mxu1 %v4698_v51  ;;  %v2408_v35 = vmax.f32 %v2182_v1, 0.0  ;;  %v2410_v18 = vmax.f32 %v2225_v3, 0.0  ;;  %v4714_v46 = vld [vmem:[%s5064_s28 + $0x1b0] sm:$0xff]   ;;  %v4715_v50 = vld [vmem:[%s5064_s28 + $0x178] sm:$0xff]  }
 0xcbd   : > { %v2423_v15 = vmax.f32 %v2184_v4, 0.0  ;;  %v2425_v16 = vmax.f32 %v2227_v5, 0.0  ;;  %4390 = vmatprep.subr.bf16.mxu0 %v4699_v62  ;;  %4412 = vmatprep.subr.bf16.mxu1 %v4700_v0  ;;  %v1695_v34 = vrot.slane %v5380_v57, %v5105_v23  ;;  %v1703_v41 = vrot.slane %v5380_v57, %v1670_v60  ;;  %v4716_v23 = vld [vmem:[%s5064_s28 + $0x1f8] sm:$0xff]  }
 0xcbe   : > { %v2424_v63 = vmax.f32 %v2186_v9, 0.0  ;;  %v2426_v22 = vmax.f32 %v2229_v10, 0.0  ;;  %v4718_v20 = vld [vmem:[%s5064_s28 + $0x1b8] sm:$0xff]   ;;  %v4719_v9 = vld [vmem:[%s5064_s28 + $0x240] sm:$0xff]  }
 0xcbf   : > { %v5419_v2 = vpack.c.bf16 %v2423_v15, %v2407_v13  ;;  %v5421_v24 = vpack.c.bf16 %v2425_v16, %v2409_v14  ;;  %v4720_v10 = vld [vmem:[%s5064_s28 + $0x2c0] sm:$0xff]  }
 0xcc0   : > { %v2440_v25 = vpack.c.bf16 %v2424_v63, %v2408_v35  ;;  %v2442_v26 = vpack.c.bf16 %v2426_v22, %v2410_v18  ;;  %4391 = vmatpush3.bf16.msra.mxu0 %v4701_v11  ;;  %4413 = vmatpush3.bf16.msra.mxu1 %v4702_v12  ;;  %v4721_v35 = vld [vmem:[%s5064_s28 + $0x200] sm:$0xff]   ;;  %v4723_v63 = vld [vmem:[%s5064_s28 + $0x248] sm:$0xff]  }
 0xcc1   : > { %4392 = vmatprep.subr.bf16.mxu0 %v4703_v17  ;;  %4414 = vmatprep.subr.bf16.mxu1 %v4704_v8  ;;  %v4722_v18 = vld [vmem:[%s5064_s28 + $0x280] sm:$0xff]   ;;  %v4724_v22 = vld [vmem:[%s5064_s28 + $0x2c8] sm:$0xff]  }
 0xcc2   : > { %3596 = vmatprep.mubr.bf16.mxu0 %v2440_v25  ;;  %3637 = vmatprep.mubr.bf16.mxu1 %v2442_v26  ;;  %v4725_v25 = vld [vmem:[%s5064_s28 + $0x208] sm:$0xff]   ;;  %v1707_v26 = vrot.slane %v5380_v57, %v1674_v36  ;;  %v4729_v36 = vld [vmem:[%s5064_s28 + $0x210] sm:$0xff]  }
 0xcc4   : > { %4393 = vmatpush3.bf16.msra.mxu0 %v4705_v27  ;;  %4415 = vmatpush3.bf16.msra.mxu1 %v4706_v28  ;;  %v4726_v27 = vld [vmem:[%s5064_s28 + $0x288] sm:$0xff]   ;;  %v4727_v28 = vld [vmem:[%s5064_s28 + $0x250] sm:$0xff]  }
 0xcc5   : > { %4394 = vmatprep.subr.bf16.mxu0 %v4707_v29  ;;  %4416 = vmatprep.subr.bf16.mxu1 %v4708_v54  ;;  %v4728_v29 = vld [vmem:[%s5064_s28 + $0x2d0] sm:$0xff]  }
 0xcc8   : > { %v2265_v42 = vpop.f32.mrb[32].mxu0  ;;  %v2308_v43 = vpop.f32.mrb[36].mxu1  ;;  %4395 = vmatpush3.bf16.msra.mxu0 %v4709_v30  ;;  %4417 = vmatpush3.bf16.msra.mxu1 %v4710_v31 }
 0xcc9   : > { %v2266_v47 = vadd.f32 %v2265_v42, %v1691_v32  ;;  %v2309_v45 = vadd.f32 %v2308_v43, %v1699_v33  ;;  %v2267_v59 = vpop.f32.mrb[33].mxu0  ;;  %v2310_v48 = vpop.f32.mrb[37].mxu1  ;;  %4396 = vmatprep.subr.bf16.mxu0 %v4711_v39  ;;  %4418 = vmatprep.subr.bf16.mxu1 %v4712_v40  ;;  %v4730_v40 = vld [vmem:[%s5064_s28 + $0x290] sm:$0xff]  }
 0xcca   : > { %v2268_v51 = vadd.f32 %v2267_v59, %v1695_v34  ;;  %v2311_v55 = vadd.f32 %v2310_v48, %v1703_v41  ;;  %v2269_v49 = vpop.f32.mrb[34].mxu0  ;;  %v2312_v60 = vpop.f32.mrb[38].mxu1  ;;  %v4733_v59 = vld [vmem:[%s5064_s28 + $0x218] sm:$0xff]  }
 0xccb   : > { %v2270_v61 = vadd.f32 %v2269_v49, %v1691_v32  ;;  %v2313_v56 = vadd.f32 %v2312_v60, %v1699_v33  ;;  %v2271_v62 = vpop.f32.mrb[35].mxu0  ;;  %v2314_v0 = vpop.f32.mrb[39].mxu1  ;;  %v2411_v4 = vmax.f32 %v2266_v47, 0.0  ;;  %v2413_v5 = vmax.f32 %v2309_v45, 0.0  ;;  %v4735_v49 = vld [vmem:[%s5064_s28 + $0x260] sm:$0xff]  }
 0xccc   : > { %v2272_v1 = vadd.f32 %v2271_v62, %v1695_v34  ;;  %v2315_v3 = vadd.f32 %v2314_v0, %v1703_v41  ;;  %4397 = vmatpush3.bf16.msra.mxu0 %v4713_v21  ;;  %4419 = vmatpush3.bf16.msra.mxu1 %v4714_v46  ;;  %v2412_v11 = vmax.f32 %v2268_v51, 0.0  ;;  %v2414_v12 = vmax.f32 %v2311_v55, 0.0  ;;  %v4734_v55 = vld [vmem:[%s5064_s28 + $0x298] sm:$0xff]   ;;  %v4736_v62 = vld [vmem:[%s5064_s28 + $0x2e0] sm:$0xff]  }
 0xccd   : > { %v2427_v6 = vmax.f32 %v2270_v61, 0.0  ;;  %v2429_v7 = vmax.f32 %v2313_v56, 0.0  ;;  %4398 = vmatprep.subr.bf16.mxu0 %v4715_v50  ;;  %4420 = vmatprep.subr.bf16.mxu1 %v4716_v23 }
 0xcce   : > { %v2428_v13 = vmax.f32 %v2272_v1, 0.0  ;;  %v2430_v14 = vmax.f32 %v2315_v3, 0.0 }
 0xccf   : > { %v5449_v15 = vpack.c.bf16 %v2427_v6, %v2411_v4  ;;  %v5451_v16 = vpack.c.bf16 %v2429_v7, %v2413_v5  ;;  %v4738_v4 = vld [vmem:[%s5064_s28 + $0x2a0] sm:$0xff]   ;;  %v4739_v5 = vld [vmem:[%s5064_s28 + $0x268] sm:$0xff]  }
 0xcd0   : > { %v2444_v17 = vpack.c.bf16 %v2428_v13, %v2412_v11  ;;  %v2446_v8 = vpack.c.bf16 %v2430_v14, %v2414_v12  ;;  %4399 = vmatpush3.bf16.msra.mxu0 %v4717_v44  ;;  %4421 = vmatpush3.bf16.msra.mxu1 %v4718_v20  ;;  %v4737_v20 = vld [vmem:[%s5064_s28 + $0x220] sm:$0xff]   ;;  %v4740_v6 = vld [vmem:[%s5064_s28 + $0x2e8] sm:$0xff]   ;;  %v4744_v11 = vld [vmem:[%s5064_s28 + $0x2f0] sm:$0xff]  }
 0xcd1   : > { %4428 = vmatprep.subr.bf16.mxu0 %v4719_v9  ;;  %4450 = vmatprep.subr.bf16.mxu1 %v4720_v10  ;;  %v4741_v7 = vld [vmem:[%s5064_s28 + $0x228] sm:$0xff]   ;;  %v4743_v10 = vld [vmem:[%s5064_s28 + $0x270] sm:$0xff]   ;;  %v4747_v14 = vld [vmem:[%s5064_s28 + $0x278] sm:$0xff]  }
 0xcd2   : > { %v4742_v9 = vld [vmem:[%s5064_s28 + $0x2a8] sm:$0xff]   ;;  %v4745_v12 = vld [vmem:[%s5064_s28 + $0x230] sm:$0xff]  }
 0xcd3   : > { %3597 = vmatmul.mubr.bf16.vlgmr.msra.gmra.mrb[44].mxu0 %v5419_v2  ;;  %3638 = vmatmul.mubr.bf16.vlgmr.msra.gmra.mrb[48].mxu1 %v5421_v24  ;;  %v1711_v2 = vrot.slane %v5380_v57, %v1678_v37  ;;  %v1719_v24 = vrot.slane %v5380_v57, %v1686_v38  ;;  %v4731_v37 = vld [vmem:[%s5064_s28 + $0x258] sm:$0xff]   ;;  %v4746_v13 = vld [vmem:[%s5064_s28 + $0x2b0] sm:$0xff]  }
 0xcd4   : > { %4429 = vmatpush3.bf16.msra.mxu0 %v4721_v35  ;;  %3678 = vmatprep.mubr.bf16.mxu0 %v2444_v17  ;;  %v4732_v38 = vld [vmem:[%s5064_s28 + $0x2d8] sm:$0xff]  }
 0xcd5   : > { %4451 = vmatpush3.bf16.msra.mxu1 %v4722_v18  ;;  %3719 = vmatprep.mubr.bf16.mxu1 %v2446_v8  ;;  %v4748_v17 = vld [vmem:[%s5064_s28 + $0x2f8] sm:$0xff]   ;;  %v4751_v18 = vld [vmem:[%s5064_s28 + $0x340] sm:$0xff]  }
 0xcd6   : > { %4430 = vmatprep.subr.bf16.mxu0 %v4723_v63  ;;  %4452 = vmatprep.subr.bf16.mxu1 %v4724_v22  ;;  %v4749_v8 = vld [vmem:[%s5064_s28 + $0x238] sm:$0xff]   ;;  %v4752_v63 = vld [vmem:[%s5064_s28 + $0x3c0] sm:$0xff]  }
 0xcd7   : > { %v4750_v35 = vld [vmem:[%s5064_s28 + $0x2b8] sm:$0xff]   ;;  %v4753_v22 = vld [vmem:[%s5064_s28 + $0x300] sm:$0xff]  }
 0xcd8   : > { %v2351_v54 = vpop.f32.mrb[36].mxu0  ;;  %v2394_v30 = vpop.f32.mrb[40].mxu1  ;;  %4431 = vmatpush3.bf16.msra.mxu0 %v4725_v25  ;;  %v4754_v25 = vld [vmem:[%s5064_s28 + $0x380] sm:$0xff]  }
 0xcd9   : > { %v2352_v31 = vadd.f32 %v2351_v54, %v1707_v26  ;;  %v2395_v32 = vadd.f32 %v2394_v30, %v5383_v58  ;;  %4453 = vmatpush3.bf16.msra.mxu1 %v4726_v27  ;;  %v2353_v33 = vpop.f32.mrb[37].mxu0  ;;  %v2396_v39 = vpop.f32.mrb[41].mxu1  ;;  %4432 = vmatprep.subr.bf16.mxu0 %v4727_v28  ;;  %v4756_v27 = vld [vmem:[%s5064_s28 + $0x3c8] sm:$0xff]   ;;  %v4763_v54 = vld [vmem:[%s5064_s28 + $0x358] sm:$0xff]  }
 0xcda   : > { %v2354_v34 = vadd.f32 %v2353_v33, %v1711_v2  ;;  %v2397_v19 = vadd.f32 %v2396_v39, %v1719_v24  ;;  %v2355_v41 = vpop.f32.mrb[38].mxu0  ;;  %v2398_v57 = vpop.f32.mrb[42].mxu1  ;;  %4454 = vmatprep.subr.bf16.mxu1 %v4728_v29  ;;  %v4757_v28 = vld [vmem:[%s5064_s28 + $0x308] sm:$0xff]   ;;  %v4760_v29 = vld [vmem:[%s5064_s28 + $0x3d0] sm:$0xff]   ;;  %v4764_v30 = vld [vmem:[%s5064_s28 + $0x3d8] sm:$0xff]  }
 0xcdb   : > { %v2356_v42 = vadd.f32 %v2355_v41, %v1707_v26  ;;  %v2399_v43 = vadd.f32 %v2398_v57, %v5383_v58  ;;  %v2357_v21 = vpop.f32.mrb[39].mxu0  ;;  %v2400_v46 = vpop.f32.mrb[43].mxu1  ;;  %v2415_v48 = vmax.f32 %v2352_v31, 0.0  ;;  %v2417_v50 = vmax.f32 %v2395_v32, 0.0  ;;  %v4755_v26 = vld [vmem:[%s5064_s28 + $0x348] sm:$0xff]   ;;  %v4766_v31 = vld [vmem:[%s5064_s28 + $0x398] sm:$0xff]  }
 0xcdc   : > { %v2358_v47 = vadd.f32 %v2357_v21, %v1711_v2  ;;  %v2401_v45 = vadd.f32 %v2400_v46, %v1719_v24  ;;  %4433 = vmatpush3.bf16.msra.mxu0 %v4729_v36  ;;  %v2416_v60 = vmax.f32 %v2354_v34, 0.0  ;;  %v2418_v58 = vmax.f32 %v2397_v19, 0.0  ;;  %v4758_v2 = vld [vmem:[%s5064_s28 + $0x388] sm:$0xff]   ;;  %v4759_v24 = vld [vmem:[%s5064_s28 + $0x350] sm:$0xff]   ;;  %v4765_v36 = vld [vmem:[%s5064_s28 + $0x318] sm:$0xff]  }
 0xcdd   : > { %v2431_v23 = vmax.f32 %v2356_v42, 0.0  ;;  %v2433_v51 = vmax.f32 %v2399_v43, 0.0  ;;  %4455 = vmatpush3.bf16.msra.mxu1 %v4730_v40  ;;  %4434 = vmatprep.subr.bf16.mxu0 %v4731_v37  ;;  %v4767_v32 = vld [vmem:[%s5064_s28 + $0x360] sm:$0xff]   ;;  %v4771_v37 = vld [vmem:[%s5064_s28 + $0x368] sm:$0xff]   ;;  %v4775_v57 = vld [vmem:[%s5064_s28 + $0x370] sm:$0xff]  }
 0xcde   : > { %v2432_v61 = vmax.f32 %v2358_v47, 0.0  ;;  %v2434_v56 = vmax.f32 %v2401_v45, 0.0  ;;  %4456 = vmatprep.subr.bf16.mxu1 %v4732_v38  ;;  %v4768_v33 = vld [vmem:[%s5064_s28 + $0x3e0] sm:$0xff]   ;;  %v4772_v34 = vld [vmem:[%s5064_s28 + $0x3e8] sm:$0xff]   ;;  %v4776_v38 = vld [vmem:[%s5064_s28 + $0x3f0] sm:$0xff]  }
 0xcdf   : > { %v5482_v0 = vpack.c.bf16 %v2431_v23, %v2415_v48  ;;  %v5484_v1 = vpack.c.bf16 %v2433_v51, %v2417_v50  ;;  %v4769_v39 = vld [vmem:[%s5064_s28 + $0x320] sm:$0xff]   ;;  %v4773_v19 = vld [vmem:[%s5064_s28 + $0x328] sm:$0xff]   ;;  %v4777_v42 = vld [vmem:[%s5064_s28 + $0x330] sm:$0xff]  }
 0xce0   : > { %v2448_v3 = vpack.c.bf16 %v2432_v61, %v2416_v60  ;;  %v2450_v44 = vpack.c.bf16 %v2434_v56, %v2418_v58  ;;  %4435 = vmatpush3.bf16.msra.mxu0 %v4733_v59  ;;  %v4770_v40 = vld [vmem:[%s5064_s28 + $0x3a0] sm:$0xff]   ;;  %v4774_v41 = vld [vmem:[%s5064_s28 + $0x3a8] sm:$0xff]   ;;  %v4778_v43 = vld [vmem:[%s5064_s28 + $0x3b0] sm:$0xff]  }
 0xce1   : > { %4457 = vmatpush3.bf16.msra.mxu1 %v4734_v55  ;;  %4436 = vmatprep.subr.bf16.mxu0 %v4735_v49  ;;  %v4779_v21 = vld [vmem:[%s5064_s28 + $0x378] sm:$0xff]   ;;  %v4176_v50 = vld [vmem:[%s673_s20] ss:$0 sm:$0xff] }
 0xce2   : > { %4458 = vmatprep.subr.bf16.mxu1 %v4736_v62  ;;  %v4780_v46 = vld [vmem:[%s5064_s28 + $0x3f8] sm:$0xff]  }
 0xce3   : > { %v4781_v47 = vld [vmem:[%s5064_s28 + $0x338] sm:$0xff]  }
 0xce4   : > { %4437 = vmatpush3.bf16.msra.mxu0 %v4737_v20  ;;  %v4782_v45 = vld [vmem:[%s5064_s28 + $0x3b8] sm:$0xff]  }
 0xce5   : > { %4459 = vmatpush3.bf16.msra.mxu1 %v4738_v4  ;;  %4438 = vmatprep.subr.bf16.mxu0 %v4739_v5 }
 0xce6   : > { %4460 = vmatprep.subr.bf16.mxu1 %v4740_v6 }
 0xce8   : > { %4439 = vmatpush3.bf16.msra.mxu0 %v4741_v7 }
 0xce9   : > { %4461 = vmatpush3.bf16.msra.mxu1 %v4742_v9  ;;  %4440 = vmatprep.subr.bf16.mxu0 %v4743_v10 }
 0xcea   : > { %4462 = vmatprep.subr.bf16.mxu1 %v4744_v11 }
 0xcec   : > { %4441 = vmatpush3.bf16.msra.mxu0 %v4745_v12 }
 0xced   : > { %4463 = vmatpush3.bf16.msra.mxu1 %v4746_v13  ;;  %4442 = vmatprep.subr.bf16.mxu0 %v4747_v14 }
 0xcee   : > { %4464 = vmatprep.subr.bf16.mxu1 %v4748_v17 }
 0xcf0   : > { %4443 = vmatpush3.bf16.msra.mxu0 %v4749_v8 }
 0xcf1   : > { %4465 = vmatpush3.bf16.msra.mxu1 %v4750_v35  ;;  %4472 = vmatprep.subr.bf16.mxu0 %v4751_v18 }
 0xcf2   : > { %4494 = vmatprep.subr.bf16.mxu1 %v4752_v63 }
 0xcf3   : > { %3679 = vmatmul.mubr.bf16.vlgmr.msra.gmra.mrb[48].mxu0 %v5449_v15  ;;  %v4761_v15 = vld [vmem:[%s5064_s28 + $0x310] sm:$0xff]  }
 0xcf4   : > { %3720 = vmatmul.mubr.bf16.vlgmr.msra.gmra.mrb[52].mxu1 %v5451_v16  ;;  %4473 = vmatpush3.bf16.msra.mxu0 %v4753_v22  ;;  %v4762_v16 = vld [vmem:[%s5064_s28 + $0x390] sm:$0xff]  }
 0xcf5   : > { %3760 = vmatprep.mubr.bf16.mxu0 %v2448_v3  ;;  %4495 = vmatpush3.bf16.msra.mxu1 %v4754_v25 }
 0xcf6   : > { %3801 = vmatprep.mubr.bf16.mxu1 %v2450_v44  ;;  %4474 = vmatprep.subr.bf16.mxu0 %v4755_v26 }
 0xcf7   : > { %4496 = vmatprep.subr.bf16.mxu1 %v4756_v27 }
 0xcf8   : > { %4475 = vmatpush3.bf16.msra.mxu0 %v4757_v28 }
 0xcf9   : > { %4497 = vmatpush3.bf16.msra.mxu1 %v4758_v2  ;;  %4476 = vmatprep.subr.bf16.mxu0 %v4759_v24 }
 0xcfa   : > { %4498 = vmatprep.subr.bf16.mxu1 %v4760_v29 }
 0xcfc   : > { %4477 = vmatpush3.bf16.msra.mxu0 %v4761_v15 }
 0xcfd   : > { %4499 = vmatpush3.bf16.msra.mxu1 %v4762_v16  ;;  %4478 = vmatprep.subr.bf16.mxu0 %v4763_v54 }
 0xcfe   : > { %4500 = vmatprep.subr.bf16.mxu1 %v4764_v30 }
 0xd00   : > { %4479 = vmatpush3.bf16.msra.mxu0 %v4765_v36 }
 0xd01   : > { %4501 = vmatpush3.bf16.msra.mxu1 %v4766_v31  ;;  %4480 = vmatprep.subr.bf16.mxu0 %v4767_v32 }
 0xd02   : > { %4502 = vmatprep.subr.bf16.mxu1 %v4768_v33 }
 0xd04   : > { %4481 = vmatpush3.bf16.msra.mxu0 %v4769_v39 }
 0xd05   : > { %4503 = vmatpush3.bf16.msra.mxu1 %v4770_v40  ;;  %4482 = vmatprep.subr.bf16.mxu0 %v4771_v37 }
 0xd06   : > { %4504 = vmatprep.subr.bf16.mxu1 %v4772_v34 }
 0xd08   : > { %4483 = vmatpush3.bf16.msra.mxu0 %v4773_v19 }
 0xd09   : > { %4505 = vmatpush3.bf16.msra.mxu1 %v4774_v41  ;;  %4484 = vmatprep.subr.bf16.mxu0 %v4775_v57 }
 0xd0a   : > { %4506 = vmatprep.subr.bf16.mxu1 %v4776_v38 }
 0xd0c   : > { %4485 = vmatpush3.bf16.msra.mxu0 %v4777_v42 }
 0xd0d   : > { %4507 = vmatpush3.bf16.msra.mxu1 %v4778_v43  ;;  %4486 = vmatprep.subr.bf16.mxu0 %v4779_v21 }
 0xd0e   : > { %4508 = vmatprep.subr.bf16.mxu1 %v4780_v46 }
 0xd10   : > { %4487 = vmatpush3.bf16.msra.mxu0 %v4781_v47 }
 0xd11   : > { %4509 = vmatpush3.bf16.msra.mxu1 %v4782_v45 }
 0xd13   : > { %3761 = vmatmul.mubr.bf16.vlgmr.msra.gmra.mrb[52].mxu0 %v5482_v0 }
 0xd14   : > { %3802 = vmatmul.mubr.bf16.vlgmr.msra.gmra.mrb[56].mxu1 %v5484_v1 }
 0xd86   : > { %v4356_v59 = vpop.f32.mrb[40].mxu0  ;;  %v4378_v48 = vpop.f32.mrb[44].mxu1 }
 0xd87   : > { %v4357_v23 = vpop.f32.mrb[41].mxu0  ;;  %v4379_v51 = vpop.f32.mrb[45].mxu1 }
 0xd88   : > { %v4358_v55 = vadd.f32 %v4357_v23, %v4356_v59  ;;  %v4380_v49 = vadd.f32 %v4379_v51, %v4378_v48  ;;  %v4359_v60 = vpop.f32.mrb[42].mxu0  ;;  %v4381_v58 = vpop.f32.mrb[46].mxu1 }
 0xd89   : > { %v4360_v61 = vpop.f32.mrb[43].mxu0  ;;  %v4382_v56 = vpop.f32.mrb[47].mxu1 }
 0xd8a   : > { %v3517_v62 = vadd.f32 %v4358_v55, %v4176_v50  ;;  %v4361_v3 = vadd.f32 %v4360_v61, %v4359_v60  ;;  %v4383_v0 = vadd.f32 %v4382_v56, %v4381_v58 }
 0xd8c   : > { %v3558_v44 = vadd.f32 %v4380_v49, %v3517_v62  ;;  %v3520_v1 = vadd.f32 %v4361_v3, %v4176_v50 }
 0xd8e   : > { %v3561_v20 = vadd.f32 %v4383_v0, %v3520_v1 }
 0xda6   : > { %v4400_v4 = vpop.f32.mrb[44].mxu0  ;;  %v4422_v5 = vpop.f32.mrb[48].mxu1 }
 0xda7   : > { %v4401_v6 = vpop.f32.mrb[45].mxu0  ;;  %v4423_v7 = vpop.f32.mrb[49].mxu1 }
 0xda8   : > { %v4402_v9 = vadd.f32 %v4401_v6, %v4400_v4  ;;  %v4424_v10 = vadd.f32 %v4423_v7, %v4422_v5  ;;  %v4403_v11 = vpop.f32.mrb[46].mxu0  ;;  %v4425_v12 = vpop.f32.mrb[50].mxu1 }
 0xda9   : > { %v4404_v13 = vpop.f32.mrb[47].mxu0  ;;  %v4426_v14 = vpop.f32.mrb[51].mxu1 }
 0xdaa   : > { %v3599_v17 = vadd.f32 %v4402_v9, %v3558_v44  ;;  %v4405_v8 = vadd.f32 %v4404_v13, %v4403_v11  ;;  %v4427_v35 = vadd.f32 %v4426_v14, %v4425_v12  ;;  %v4306_v12 = vld [vmem:[%s679_s29] ss:$0 sm:$0xff] }
 0xdac   : > { %v3640_v18 = vadd.f32 %v4424_v10, %v3599_v17  ;;  %v3602_v63 = vadd.f32 %v4405_v8, %v3561_v20  ;;  %v4305_v10 = vld [vmem:[%s676_s4] ss:$0 sm:$0xff] }
 0xdae   : > { %v3643_v22 = vadd.f32 %v4427_v35, %v3602_v63 }
 0xdc6   : > { %v4444_v25 = vpop.f32.mrb[48].mxu0 }
 0xdc7   : > { %v4466_v26 = vpop.f32.mrb[52].mxu1  ;;  %v4445_v27 = vpop.f32.mrb[49].mxu0 }
 0xdc8   : > { %v4446_v28 = vadd.f32 %v4445_v27, %v4444_v25  ;;  %v4467_v2 = vpop.f32.mrb[53].mxu1  ;;  %v4447_v24 = vpop.f32.mrb[50].mxu0 }
 0xdc9   : > { %v4468_v29 = vadd.f32 %v4467_v2, %v4466_v26  ;;  %v4469_v15 = vpop.f32.mrb[54].mxu1  ;;  %v4448_v16 = vpop.f32.mrb[51].mxu0 }
 0xdca   : > { %v3681_v54 = vadd.f32 %v4446_v28, %v3640_v18  ;;  %v4449_v30 = vadd.f32 %v4448_v16, %v4447_v24  ;;  %v4470_v36 = vpop.f32.mrb[55].mxu1 }
 0xdcb   : > { %v4471_v31 = vadd.f32 %v4470_v36, %v4469_v15 }
 0xdcc   : > { %v3722_v32 = vadd.f32 %v4468_v29, %v3681_v54  ;;  %v3684_v33 = vadd.f32 %v4449_v30, %v3643_v22 }
 0xdce   : > { %v3725_v39 = vadd.f32 %v4471_v31, %v3684_v33 }
 0xde6   : > { %v4488_v40 = vpop.f32.mrb[52].mxu0 }
 0xde7   : > { %v4510_v37 = vpop.f32.mrb[56].mxu1  ;;  %v4489_v34 = vpop.f32.mrb[53].mxu0 }
 0xde8   : > { %v4490_v19 = vadd.f32 %v4489_v34, %v4488_v40  ;;  %v4511_v41 = vpop.f32.mrb[57].mxu1  ;;  %v4491_v57 = vpop.f32.mrb[54].mxu0 }
 0xde9   : > { %v4512_v38 = vadd.f32 %v4511_v41, %v4510_v37  ;;  %v4513_v42 = vpop.f32.mrb[58].mxu1  ;;  %v4492_v43 = vpop.f32.mrb[55].mxu0 }
 0xdea   : > { %v3763_v21 = vadd.f32 %v4490_v19, %v3722_v32  ;;  %v4493_v46 = vadd.f32 %v4492_v43, %v4491_v57  ;;  %v4514_v47 = vpop.f32.mrb[59].mxu1 }
 0xdeb   : > { %v4515_v45 = vadd.f32 %v4514_v47, %v4513_v42 }
 0xdec   : > { %v3804_v59 = vadd.f32 %v4512_v38, %v3763_v21  ;;  %v3766_v48 = vadd.f32 %v4493_v46, %v3725_v39 }
 0xdee   : > { %v3807_v50 = vadd.f32 %v4515_v45, %v3766_v48  ;;  %v3810_v23 = vadd.f32 %v3804_v59, %v5274_v52 }
 0xdf0   : > { %v3812_v51 = vsel %vm763_vm1, %v3810_v23, 0.0  ;;  %v3811_v55 = vadd.f32 %v3807_v50, %v5276_v53 }
 0xdf1   : > { %3813 = vadd.xlane.f32.xlu1 %v3812_v51 }
 0xdf2   : > { %v3815_v49 = vsel %vm763_vm1, %v3811_v55, 0.0 }
 0xdf5   : > { %3816 = vadd.xlane.f32.xlu1 %v3815_v49 }
 0xe7e   : > { %v3814_v60 = vpop.xlane.xlu1 %3813 }
 0xe7f   : > { %v3818_v58 = vmul.f32 0.015625, %v3814_v60 }
 0xe81   : > { %v3820_v61 = vsub.f32 %v3810_v23, %v3818_v58 }
 0xe82   : > { %v3817_v56 = vpop.xlane.xlu1 %3816 }
 0xe83   : > { %v3819_v62 = vmul.f32 0.015625, %v3817_v56  ;;  %v3822_v3 = vmul.f32 %v3820_v61, %v3820_v61 }
 0xe85   : > { %v3821_v0 = vsub.f32 %v3811_v55, %v3819_v62  ;;  %v3824_v44 = vsel %vm763_vm1, %v3822_v3, 0.0 }
 0xe86   : > { %3825 = vadd.xlane.f32.xlu0 %v3824_v44 }
 0xe87   : > { %v3823_v52 = vmul.f32 %v3821_v0, %v3821_v0 }
 0xe89   : > { %v3827_v1 = vsel %vm763_vm1, %v3823_v52, 0.0 }
 0xe8a   : > { %3828 = vadd.xlane.f32.xlu1 %v3827_v1 }
 0xf13   : > { %v3826_v53 = vpop.xlane.xlu0 %3825 }
 0xf14   : > { %v3830_v20 = vmul.f32 0.015625, %v3826_v53 }
 0xf16   : > { %v3832_v4 = vadd.f32 1e-05, %v3830_v20 }
 0xf17   : > { %v3829_v5 = vpop.xlane.xlu1 %3828 }
 0xf18   : > { %4819 = vrsqrt.f32 %v3832_v4  ;;  %v3831_v6 = vmul.f32 0.015625, %v3829_v5 }
 0xf1a   : > { %v3833_v7 = vadd.f32 1e-05, %v3831_v6 }
 0xf1c   : > { %4821 = vrsqrt.f32 %v3833_v7 }
 0xf22   : > { %v4820_v9 = vpop.eup %4819 }
 0xf23   : > { %v3836_v11 = vmul.f32 %v4820_v9, %v3820_v61 }
 0xf25   : > { %v3845_v13 = vmul.f32 %v4305_v10, %v3836_v11 }
 0xf26   : > { %v4822_v14 = vpop.eup %4821 }
 0xf27   : > { %v3854_v17 = vadd.f32 %v4306_v12, %v3845_v13  ;;  %v3837_v8 = vmul.f32 %v4822_v14, %v3821_v0  ;;  %3861 = sbr.rel (%p4307_p13) target bundleno = 3886 (0xf2e), region = 84 }
 0xf29   : > { %3856 = vst.msk [vmem:[#allocation2] sm:$0xff] %vm763_vm1, %v3854_v17  ;;  %v3846_v35 = vmul.f32 %v4305_v10, %v3837_v8  ;;  %3862 = vst.msk [vmem:[%s5077_s9] sm:$0xff] (!%p4307_p13), %vm763_vm1, %v3854_v17 }
 0xf2b   : > { %v3855_v18 = vadd.f32 %v4306_v12, %v3846_v35 }
 0xf2d   : > { %3857 = vst.msk [vmem:[#allocation2 + $0x8] sm:$0xff] %vm763_vm1, %v3855_v18  ;;  %3863 = vst.msk [vmem:[%s5077_s9 + $0x8] sm:$0xff] (!%p4307_p13), %vm763_vm1, %v3855_v18 }
 0xf2e PF: > { %s5630_s30 = sld [smem:[#allocation9_spill]]  ;;  %s5631_s23 = sld [smem:[#allocation7_spill]] }
 0xf2f   : > { %s5632_s24 = sld [smem:[#allocation8_spill]]  ;;  %s5633_s25 = sld [smem:[#allocation10_spill]] }
 0xf30   : > { %s5634_s0 = sld [smem:[#allocation11_spill]] }
 0xf34   : > { %s31_s26 = sadd.s32 1, %s5630_s30  }
 0xf35   : > { %p28_p0 = scmp.ge.s32.totalorder %s31_s26, 6  }
 0xf37   :  { %30 = sbr.rel (!%p28_p0) target bundleno = 20 (0x14), region = 150 }

</bundles_post_ra>
